<compile_context>
chip_gen: v5e
topology: v5e:2x2
jax: 0.10.0
libtpu: 0.0.40
codegen_flags: <defaults>
</compile_context>

<pallas_src>
import functools

import jax
import jax.numpy as jnp
from jax import lax
from jax.experimental import pallas as pl
from jax.experimental.pallas import tpu as pltpu

# Full f32 matmul accuracy everywhere (Riccati-style recursions amplify
# rounding; also keeps the pure-JAX reference numerically comparable).
jax.config.update("jax_default_matmul_precision", "highest")


def _dpg_value_kernel(slab_ref, sig_ref, out_ref, V_sc, *, corner_idx, pad):
    """Processes one reversed horizon chunk of the backward value recursion."""
    j = pl.program_id(0)
    nchunks = pl.num_programs(0)
    Hc = slab_ref.shape[0]
    P = pad

    @pl.when(j == 0)
    def _init():                      # terminal value function V_H == 0
        V_sc[...] = jnp.zeros_like(V_sc)

    # One-hot mask selecting the homogeneous "constant" corner of V~.
    row = lax.broadcasted_iota(jnp.int32, (P, P), 0)
    col = lax.broadcasted_iota(jnp.int32, (P, P), 1)
    corner = ((row == corner_idx) & (col == corner_idx)).astype(jnp.float32)

    dot = lambda a, b: jnp.dot(a, b, preferred_element_type=jnp.float32,
                               precision=lax.Precision.HIGHEST)

    def step(i, V):
        t = Hc - 1 - i                 # walk this chunk backwards in time
        slab = slab_ref[t]             # (P, 4P) = [ A | A^T | B | W~ ]
        A = slab[:, 0 * P:1 * P]       # closed-loop transition  F~ M~
        A_T = slab[:, 1 * P:2 * P]     # pre-transposed (no XLU .T on the chain)
        B = slab[:, 2 * P:3 * P]       # closed-loop cost  M~^T C~ M~
        Wt = slab[:, 3 * P:4 * P]      # [[W, 0], [0, 0]]
        # tr(W V): VPU multiply + XLU reduce, independent of the matmul chain;
        # its contribution is added after the two dependent matmuls.
        trWV = jnp.sum(Wt * V, keepdims=True)                 # (1, 1)
        return B + dot(A_T, dot(V, A)) + trWV * corner

    unroll = Hc if Hc <= 16 else (8 if Hc % 8 == 0 else 1)
    V = lax.fori_loop(0, Hc, step, V_sc[...], unroll=unroll)
    V_sc[...] = V

    @pl.when(j == nchunks - 1)
    def _finalize():
        # E_{x0~N(mu,Sigma)}[V_0(x0)] = 0.5 * sum(V0~ * Sigma~)
        out_ref[...] = 0.5 * jnp.sum(sig_ref[...] * V, keepdims=True)


def policy_loss(policy, dynamics, cost, rho, *, n_state, n_ctrl, horizon,
                chunk=None, vmem_budget_bytes=8 * 1024 * 1024):
    """DPG surrogate objective (analytic LQG policy evaluation) on TPU."""
    K, k = policy          # K: [H, m, n], k: [H, m]
    F, f, W = dynamics     # F: [H, n, n+m], f: [H, n], W: [H, n, n]
    C, c = cost            # C: [H, nt, nt], c: [H, nt]
    mean, cov = rho        # mean: [n], cov: [n, n]

    n, m, H = n_state, n_ctrl, horizon
    nt = n + m
    n1, t1 = n + 1, nt + 1
    P = max(8, ((n1 + 7) // 8) * 8)            # sublane-padded carry size

    f32 = lambda x: jnp.asarray(x, jnp.float32)
    F, W, C, K, cov = map(f32, (F, W, C, K, cov))
    f_ = f32(f).reshape(H, n, 1)
    c_ = f32(c).reshape(H, nt, 1)
    k_ = f32(k).reshape(H, m, 1)
    mean_ = f32(mean).reshape(n, 1)

    zf = lambda *s: jnp.zeros(s, jnp.float32)
    ones_h = jnp.ones((H, 1, 1), jnp.float32)

    # Homogeneous packing (one-time XLA work).
    F_aug = jnp.concatenate([
        jnp.concatenate([F, f_], axis=2),
        jnp.concatenate([zf(H, 1, nt), ones_h], axis=2)], axis=1)     # (H,n1,t1)
    C_aug = jnp.concatenate([
        jnp.concatenate([C, c_], axis=2),
        jnp.concatenate([jnp.swapaxes(c_, 1, 2), zf(H, 1, 1)], axis=2)],
        axis=1)                                                       # (H,t1,t1)
    eye_n = jnp.broadcast_to(jnp.eye(n, dtype=jnp.float32), (H, n, n))
    M_aug = jnp.concatenate([
        jnp.concatenate([eye_n, zf(H, n, 1)], axis=2),
        jnp.concatenate([K, k_], axis=2),
        jnp.concatenate([zf(H, 1, n), ones_h], axis=2)], axis=1)      # (H,t1,n1)
    W_aug = jnp.pad(W, ((0, 0), (0, 1), (0, 1)))                      # (H,n1,n1)

    # Closed-loop operands (H-parallel batched matmuls, outside the kernel).
    #   One backward step becomes  V <- B + A^T V A + tr(W V) e e^T.
    A = jnp.einsum('hij,hjk->hik', F_aug, M_aug)                      # (H,n1,n1)
    CM = jnp.einsum('hij,hjk->hik', C_aug, M_aug)                     # (H,t1,n1)
    B = jnp.einsum('hji,hjk->hik', M_aug, CM)                         # (H,n1,n1)
    A_T = jnp.swapaxes(A, 1, 2)

    Sig_aug = jnp.concatenate([
        jnp.concatenate([cov + mean_ @ mean_.T, mean_], axis=1),
        jnp.concatenate([mean_.T, jnp.ones((1, 1), jnp.float32)], axis=1)],
        axis=0)                                                       # (n1,n1)

    # Lane-dense slab: per timestep [A | A^T | B | W~], each zero-padded to
    # (P,P), packed contiguously so each chunk is one contiguous DMA.
    padPP = lambda x: jnp.pad(x, ((0, 0), (0, P - n1), (0, P - n1)))
    slab = jnp.concatenate(
        [padPP(A), padPP(A_T), padPP(B), padPP(W_aug)], axis=2)       # (H,P,4P)
    Sig_pad = jnp.pad(Sig_aug, ((0, P - n1), (0, P - n1)))            # (P,P)

    # VMEM-budget-driven chunking (double-buffered input slab).
    per_step_bytes = P * 4 * P * 4
    if chunk is None:
        chunk = max(1, vmem_budget_bytes // (2 * per_step_bytes))
    Hc = max(1, min(chunk, H))
    nchunks = (H + Hc - 1) // Hc
    H_pad = nchunks * Hc
    if H_pad != H:
        # Zero-padded (future) steps are exact no-ops (V_H = 0).
        slab = jnp.pad(slab, ((0, H_pad - H), (0, 0), (0, 0)))

    rev_t = lambda j: (nchunks - 1 - j, 0, 0)   # walk chunks backwards in time
    fix2 = lambda j: (0, 0)

    kern = functools.partial(_dpg_value_kernel, corner_idx=n1 - 1, pad=P)
    out = pl.pallas_call(
        kern,
        out_shape=jax.ShapeDtypeStruct((1, 1), jnp.float32),
        grid_spec=pltpu.PrefetchScalarGridSpec(
            num_scalar_prefetch=0,
            grid=(nchunks,),
            in_specs=[
                pl.BlockSpec((Hc, P, 4 * P), rev_t),   # [A|A^T|B|W~] slab
                pl.BlockSpec((P, P), fix2),            # Sigma~
            ],
            out_specs=pl.BlockSpec((1, 1), fix2),
            scratch_shapes=[pltpu.VMEM((P, P), jnp.float32)],   # V~ carry
        ),
        compiler_params=pltpu.CompilerParams(
            dimension_semantics=("arbitrary",),        # sequential chunk carry
            vmem_limit_bytes=32 * 1024 * 1024),
    )(slab, Sig_pad)
    return out[0, 0]


def policy_loss_ref(policy, dynamics, cost, rho):
    """Pure-JAX reference of the same forward pass (raw recursion)."""
    K, k = policy
    F, f, W = dynamics
    C, c = cost
    mean, cov = rho
    H, m, n = K.shape
    Vn = jnp.zeros((n, n), jnp.float32)
    vn = jnp.zeros((n, 1), jnp.float32)
    cn = jnp.zeros((1, 1), jnp.float32)
    for t in reversed(range(H)):
        Ft, ft, Wt = F[t], f[t].reshape(n, 1), W[t]
        Ct, ct = C[t], c[t].reshape(-1, 1)
        Kt, kt = K[t], k[t].reshape(m, 1)
        Q = Ct + Ft.T @ Vn @ Ft
        q = ct + Ft.T @ (Vn @ ft + vn)
        cq = cn + vn.T @ ft + 0.5 * ft.T @ Vn @ ft + 0.5 * jnp.trace(Wt @ Vn)
        Qxx, Qxu = Q[:n, :n], Q[:n, n:]
        Qux, Quu = Q[n:, :n], Q[n:, n:]
        qx, qu = q[:n], q[n:]
        Vn = Qxx + Qxu @ Kt + Kt.T @ Qux + Kt.T @ Quu @ Kt
        vn = qx + Qxu @ kt + Kt.T @ (Quu @ kt + qu)
        cn = cq + qu.T @ kt + 0.5 * kt.T @ Quu @ kt
    mu = mean.reshape(n, 1)
    val = 0.5 * jnp.trace(cov @ Vn) + 0.5 * mu.T @ Vn @ mu + vn.T @ mu + cn
    return val[0, 0]


if __name__ == "__main__":
    n_state, n_ctrl, horizon = 4, 2, 8
    n_tau = n_state + n_ctrl

    key = jax.random.PRNGKey(0)
    keys = jax.random.split(key, 9)

    # Policy (K, k)
    K = 0.1 * jax.random.normal(keys[0], (horizon, n_ctrl, n_state), jnp.float32)
    k = 0.1 * jax.random.normal(keys[1], (horizon, n_ctrl), jnp.float32)

    # Dynamics (F, f, W) — W symmetric PSD
    F = 0.3 * jax.random.normal(keys[2], (horizon, n_state, n_tau), jnp.float32)
    f = 0.1 * jax.random.normal(keys[3], (horizon, n_state), jnp.float32)
    Wb = jax.random.normal(keys[4], (horizon, n_state, n_state), jnp.float32)
    W = 0.1 * jnp.einsum("hij,hkj->hik", Wb, Wb) \
        + 0.05 * jnp.eye(n_state)[None]

    # Cost (C, c) — C symmetric PSD
    Cb = jax.random.normal(keys[5], (horizon, n_tau, n_tau), jnp.float32)
    C = 0.5 * jnp.einsum("hij,hkj->hik", Cb, Cb) + 0.1 * jnp.eye(n_tau)[None]
    c = 0.1 * jax.random.normal(keys[6], (horizon, n_tau), jnp.float32)

    # Initial state distribution rho = (mean, cov)
    mean = jax.random.normal(keys[7], (n_state,), jnp.float32)
    covb = jax.random.normal(keys[8], (n_state, n_state), jnp.float32)
    cov = 0.2 * covb @ covb.T + 0.1 * jnp.eye(n_state)

    policy = (K, k)
    dynamics = (F, f, W)
    cost = (C, c)
    rho = (mean, cov)

    # VMEM-budget-derived chunk -> whole horizon resident (single grid step).
    out1 = policy_loss(policy, dynamics, cost, rho,
                       n_state=n_state, n_ctrl=n_ctrl, horizon=horizon)
    out1 = jax.block_until_ready(out1)

    # Chunked path (chunk=3 -> 3 grid steps + 1 zero-padded timestep) to
    # exercise the cross-chunk VMEM carry and the padding no-op.
    out2 = policy_loss(policy, dynamics, cost, rho,
                       n_state=n_state, n_ctrl=n_ctrl, horizon=horizon, chunk=3)
    out2 = jax.block_until_ready(out2)

    ref = policy_loss_ref(policy, dynamics, cost, rho)
    assert jnp.allclose(out1, ref, rtol=1e-4, atol=1e-4), (out1, ref)
    assert jnp.allclose(out2, ref, rtol=1e-4, atol=1e-4), (out2, ref)

    print("KERNEL_OK")
</pallas_src>

<mosaic_0001>
module attributes {stable_mosaic.version = 11 : i64} {
  func.func @_dpg_value_kernel(%arg0: i32, %arg1: memref<8x8x32xf32, #tpu.memory_space<vmem>>, %arg2: memref<8x8xf32, #tpu.memory_space<vmem>>, %arg3: memref<1x1xf32, #tpu.memory_space<vmem>>, %arg4: memref<8x8xf32, #tpu.memory_space<vmem>>) attributes {dimension_semantics = [#tpu.dimension_semantics<arbitrary>], iteration_bounds = array<i64: 1>, scalar_prefetch = 0 : i64, scratch_operands = 1 : i64, tpu.core_type = #tpu.core_type<tc>, window_params = [{transform_indices = @transform_0, window_bounds = array<i64: 8, 8, 32>}, {pipeline_mode = #tpu.pipeline_mode<synchronous>, transform_indices = @transform_1, window_bounds = array<i64: 8, 8>}, {pipeline_mode = #tpu.pipeline_mode<synchronous>, transform_indices = @transform_2, window_bounds = array<i64: 1, 1>}]} {
    %c0_i32 = arith.constant 0 : i32
    %0 = arith.cmpi eq, %arg0, %c0_i32 : i32
    %1 = arith.extui %0 : i1 to i32
    %c0_i32_0 = arith.constant 0 : i32
    %2 = arith.cmpi ne, %1, %c0_i32_0 : i32
    scf.if %2 {
      %cst_56 = arith.constant 0.000000e+00 : f32
      %177 = vector.broadcast %cst_56 : f32 to vector<8x8xf32>
      %c0_57 = arith.constant 0 : index
      %c0_58 = arith.constant 0 : index
      %178 = vector.load %arg4[%c0_57, %c0_58] : memref<8x8xf32, #tpu.memory_space<vmem>>, vector<8x8xf32>
      tpu.vector_store %arg4[%c0_57, %c0_58], %177 {strides = array<i32>} : memref<8x8xf32, #tpu.memory_space<vmem>>, vector<8x8xf32>,
    } else {
    }
    %3 = tpu.iota {dimensions = array<i32: 0>} : vector<8x8xi32>
    %4 = tpu.iota {dimensions = array<i32: 1>} : vector<8x8xi32>
    %c4_i32 = arith.constant 4 : i32
    %5 = vector.broadcast %c4_i32 : i32 to vector<8x8xi32>
    %6 = arith.cmpi eq, %3, %5 : vector<8x8xi32>
    %c4_i32_1 = arith.constant 4 : i32
    %7 = vector.broadcast %c4_i32_1 : i32 to vector<8x8xi32>
    %8 = arith.cmpi eq, %4, %7 : vector<8x8xi32>
    %9 = arith.andi %6, %8 : vector<8x8xi1>
    %10 = arith.extui %9 : vector<8x8xi1> to vector<8x8xi32>
    %11 = arith.sitofp %10 : vector<8x8xi32> to vector<8x8xf32>
    %c0 = arith.constant 0 : index
    %c0_2 = arith.constant 0 : index
    %12 = vector.load %arg4[%c0, %c0_2] : memref<8x8xf32, #tpu.memory_space<vmem>>, vector<8x8xf32>
    %c0_i32_3 = arith.constant 0 : i32
    %c7_i32 = arith.constant 7 : i32
    %13 = arith.subi %c7_i32, %c0_i32_3 : i32
    %14 = arith.index_cast %13 : i32 to index
    %c0_4 = arith.constant 0 : index
    %c0_5 = arith.constant 0 : index
    %15 = vector.load %arg1[%14, %c0_4, %c0_5] : memref<8x8x32xf32, #tpu.memory_space<vmem>>, vector<1x8x32xf32>
    %16 = vector.shape_cast %15 : vector<1x8x32xf32> to vector<8x32xf32>
    %17 = vector.extract_strided_slice %16 {offsets = [0, 0], sizes = [8, 8], strides = [1, 1]} : vector<8x32xf32> to vector<8x8xf32>
    %18 = vector.extract_strided_slice %16 {offsets = [0, 8], sizes = [8, 8], strides = [1, 1]} : vector<8x32xf32> to vector<8x8xf32>
    %19 = vector.extract_strided_slice %16 {offsets = [0, 16], sizes = [8, 8], strides = [1, 1]} : vector<8x32xf32> to vector<8x8xf32>
    %20 = vector.extract_strided_slice %16 {offsets = [0, 24], sizes = [8, 8], strides = [1, 1]} : vector<8x32xf32> to vector<8x8xf32>
    %21 = arith.mulf %20, %12 : vector<8x8xf32>
    %22 = vector.shape_cast %21 : vector<8x8xf32> to vector<1x8x8xf32>
    %cst = arith.constant dense<0.000000e+00> : vector<1xf32>
    %23 = vector.multi_reduction <add>, %22, %cst [1, 2] : vector<1x8x8xf32> to vector<1xf32>
    %24 = vector.shape_cast %23 : vector<1xf32> to vector<1x1x1xf32>
    %25 = vector.extract %24[0, 0, 0] : f32 from vector<1x1x1xf32>
    %26 = vector.broadcast %25 : f32 to vector<1x1xf32>
    %cst_6 = arith.constant dense<0.000000e+00> : vector<8x8xf32>
    %27 = tpu.matmul %12, %17, %cst_6 {dimension_numbers = #tpu.dot_dimension_numbers<[1], [0], [0], [1], [0, 0, 1, 1], [], []>, precision = #tpu.contract_precision<fp32>} : vector<8x8xf32>, vector<8x8xf32>, vector<8x8xf32> -> vector<8x8xf32>
    %cst_7 = arith.constant dense<0.000000e+00> : vector<8x8xf32>
    %28 = tpu.matmul %18, %27, %cst_7 {dimension_numbers = #tpu.dot_dimension_numbers<[1], [0], [0], [1], [0, 0, 1, 1], [], []>, precision = #tpu.contract_precision<fp32>} : vector<8x8xf32>, vector<8x8xf32>, vector<8x8xf32> -> vector<8x8xf32>
    %29 = arith.addf %19, %28 : vector<8x8xf32>
    %30 = vector.broadcast %26 : vector<1x1xf32> to vector<8x8xf32>
    %31 = arith.mulf %30, %11 : vector<8x8xf32>
    %32 = arith.addf %29, %31 : vector<8x8xf32>
    %c1_i32 = arith.constant 1 : i32
    %c7_i32_8 = arith.constant 7 : i32
    %33 = arith.subi %c7_i32_8, %c1_i32 : i32
    %34 = arith.index_cast %33 : i32 to index
    %c0_9 = arith.constant 0 : index
    %c0_10 = arith.constant 0 : index
    %35 = vector.load %arg1[%34, %c0_9, %c0_10] : memref<8x8x32xf32, #tpu.memory_space<vmem>>, vector<1x8x32xf32>
    %36 = vector.shape_cast %35 : vector<1x8x32xf32> to vector<8x32xf32>
    %37 = vector.extract_strided_slice %36 {offsets = [0, 0], sizes = [8, 8], strides = [1, 1]} : vector<8x32xf32> to vector<8x8xf32>
    %38 = vector.extract_strided_slice %36 {offsets = [0, 8], sizes = [8, 8], strides = [1, 1]} : vector<8x32xf32> to vector<8x8xf32>
    %39 = vector.extract_strided_slice %36 {offsets = [0, 16], sizes = [8, 8], strides = [1, 1]} : vector<8x32xf32> to vector<8x8xf32>
    %40 = vector.extract_strided_slice %36 {offsets = [0, 24], sizes = [8, 8], strides = [1, 1]} : vector<8x32xf32> to vector<8x8xf32>
    %41 = arith.mulf %40, %32 : vector<8x8xf32>
    %42 = vector.shape_cast %41 : vector<8x8xf32> to vector<1x8x8xf32>
    %cst_11 = arith.constant dense<0.000000e+00> : vector<1xf32>
    %43 = vector.multi_reduction <add>, %42, %cst_11 [1, 2] : vector<1x8x8xf32> to vector<1xf32>
    %44 = vector.shape_cast %43 : vector<1xf32> to vector<1x1x1xf32>
    %45 = vector.extract %44[0, 0, 0] : f32 from vector<1x1x1xf32>
    %46 = vector.broadcast %45 : f32 to vector<1x1xf32>
    %cst_12 = arith.constant dense<0.000000e+00> : vector<8x8xf32>
    %47 = tpu.matmul %32, %37, %cst_12 {dimension_numbers = #tpu.dot_dimension_numbers<[1], [0], [0], [1], [0, 0, 1, 1], [], []>, precision = #tpu.contract_precision<fp32>} : vector<8x8xf32>, vector<8x8xf32>, vector<8x8xf32> -> vector<8x8xf32>
    %cst_13 = arith.constant dense<0.000000e+00> : vector<8x8xf32>
    %48 = tpu.matmul %38, %47, %cst_13 {dimension_numbers = #tpu.dot_dimension_numbers<[1], [0], [0], [1], [0, 0, 1, 1], [], []>, precision = #tpu.contract_precision<fp32>} : vector<8x8xf32>, vector<8x8xf32>, vector<8x8xf32> -> vector<8x8xf32>
    %49 = arith.addf %39, %48 : vector<8x8xf32>
    %50 = vector.broadcast %46 : vector<1x1xf32> to vector<8x8xf32>
    %51 = arith.mulf %50, %11 : vector<8x8xf32>
    %52 = arith.addf %49, %51 : vector<8x8xf32>
    %c2_i32 = arith.constant 2 : i32
    %c7_i32_14 = arith.constant 7 : i32
    %53 = arith.subi %c7_i32_14, %c2_i32 : i32
    %54 = arith.index_cast %53 : i32 to index
    %c0_15 = arith.constant 0 : index
    %c0_16 = arith.constant 0 : index
    %55 = vector.load %arg1[%54, %c0_15, %c0_16] : memref<8x8x32xf32, #tpu.memory_space<vmem>>, vector<1x8x32xf32>
    %56 = vector.shape_cast %55 : vector<1x8x32xf32> to vector<8x32xf32>
    %57 = vector.extract_strided_slice %56 {offsets = [0, 0], sizes = [8, 8], strides = [1, 1]} : vector<8x32xf32> to vector<8x8xf32>
    %58 = vector.extract_strided_slice %56 {offsets = [0, 8], sizes = [8, 8], strides = [1, 1]} : vector<8x32xf32> to vector<8x8xf32>
    %59 = vector.extract_strided_slice %56 {offsets = [0, 16], sizes = [8, 8], strides = [1, 1]} : vector<8x32xf32> to vector<8x8xf32>
    %60 = vector.extract_strided_slice %56 {offsets = [0, 24], sizes = [8, 8], strides = [1, 1]} : vector<8x32xf32> to vector<8x8xf32>
    %61 = arith.mulf %60, %52 : vector<8x8xf32>
    %62 = vector.shape_cast %61 : vector<8x8xf32> to vector<1x8x8xf32>
    %cst_17 = arith.constant dense<0.000000e+00> : vector<1xf32>
    %63 = vector.multi_reduction <add>, %62, %cst_17 [1, 2] : vector<1x8x8xf32> to vector<1xf32>
    %64 = vector.shape_cast %63 : vector<1xf32> to vector<1x1x1xf32>
    %65 = vector.extract %64[0, 0, 0] : f32 from vector<1x1x1xf32>
    %66 = vector.broadcast %65 : f32 to vector<1x1xf32>
    %cst_18 = arith.constant dense<0.000000e+00> : vector<8x8xf32>
    %67 = tpu.matmul %52, %57, %cst_18 {dimension_numbers = #tpu.dot_dimension_numbers<[1], [0], [0], [1], [0, 0, 1, 1], [], []>, precision = #tpu.contract_precision<fp32>} : vector<8x8xf32>, vector<8x8xf32>, vector<8x8xf32> -> vector<8x8xf32>
    %cst_19 = arith.constant dense<0.000000e+00> : vector<8x8xf32>
    %68 = tpu.matmul %58, %67, %cst_19 {dimension_numbers = #tpu.dot_dimension_numbers<[1], [0], [0], [1], [0, 0, 1, 1], [], []>, precision = #tpu.contract_precision<fp32>} : vector<8x8xf32>, vector<8x8xf32>, vector<8x8xf32> -> vector<8x8xf32>
    %69 = arith.addf %59, %68 : vector<8x8xf32>
    %70 = vector.broadcast %66 : vector<1x1xf32> to vector<8x8xf32>
    %71 = arith.mulf %70, %11 : vector<8x8xf32>
    %72 = arith.addf %69, %71 : vector<8x8xf32>
    %c3_i32 = arith.constant 3 : i32
    %c7_i32_20 = arith.constant 7 : i32
    %73 = arith.subi %c7_i32_20, %c3_i32 : i32
    %74 = arith.index_cast %73 : i32 to index
    %c0_21 = arith.constant 0 : index
    %c0_22 = arith.constant 0 : index
    %75 = vector.load %arg1[%74, %c0_21, %c0_22] : memref<8x8x32xf32, #tpu.memory_space<vmem>>, vector<1x8x32xf32>
    %76 = vector.shape_cast %75 : vector<1x8x32xf32> to vector<8x32xf32>
    %77 = vector.extract_strided_slice %76 {offsets = [0, 0], sizes = [8, 8], strides = [1, 1]} : vector<8x32xf32> to vector<8x8xf32>
    %78 = vector.extract_strided_slice %76 {offsets = [0, 8], sizes = [8, 8], strides = [1, 1]} : vector<8x32xf32> to vector<8x8xf32>
    %79 = vector.extract_strided_slice %76 {offsets = [0, 16], sizes = [8, 8], strides = [1, 1]} : vector<8x32xf32> to vector<8x8xf32>
    %80 = vector.extract_strided_slice %76 {offsets = [0, 24], sizes = [8, 8], strides = [1, 1]} : vector<8x32xf32> to vector<8x8xf32>
    %81 = arith.mulf %80, %72 : vector<8x8xf32>
    %82 = vector.shape_cast %81 : vector<8x8xf32> to vector<1x8x8xf32>
    %cst_23 = arith.constant dense<0.000000e+00> : vector<1xf32>
    %83 = vector.multi_reduction <add>, %82, %cst_23 [1, 2] : vector<1x8x8xf32> to vector<1xf32>
    %84 = vector.shape_cast %83 : vector<1xf32> to vector<1x1x1xf32>
    %85 = vector.extract %84[0, 0, 0] : f32 from vector<1x1x1xf32>
    %86 = vector.broadcast %85 : f32 to vector<1x1xf32>
    %cst_24 = arith.constant dense<0.000000e+00> : vector<8x8xf32>
    %87 = tpu.matmul %72, %77, %cst_24 {dimension_numbers = #tpu.dot_dimension_numbers<[1], [0], [0], [1], [0, 0, 1, 1], [], []>, precision = #tpu.contract_precision<fp32>} : vector<8x8xf32>, vector<8x8xf32>, vector<8x8xf32> -> vector<8x8xf32>
    %cst_25 = arith.constant dense<0.000000e+00> : vector<8x8xf32>
    %88 = tpu.matmul %78, %87, %cst_25 {dimension_numbers = #tpu.dot_dimension_numbers<[1], [0], [0], [1], [0, 0, 1, 1], [], []>, precision = #tpu.contract_precision<fp32>} : vector<8x8xf32>, vector<8x8xf32>, vector<8x8xf32> -> vector<8x8xf32>
    %89 = arith.addf %79, %88 : vector<8x8xf32>
    %90 = vector.broadcast %86 : vector<1x1xf32> to vector<8x8xf32>
    %91 = arith.mulf %90, %11 : vector<8x8xf32>
    %92 = arith.addf %89, %91 : vector<8x8xf32>
    %c4_i32_26 = arith.constant 4 : i32
    %c7_i32_27 = arith.constant 7 : i32
    %93 = arith.subi %c7_i32_27, %c4_i32_26 : i32
    %94 = arith.index_cast %93 : i32 to index
    %c0_28 = arith.constant 0 : index
    %c0_29 = arith.constant 0 : index
    %95 = vector.load %arg1[%94, %c0_28, %c0_29] : memref<8x8x32xf32, #tpu.memory_space<vmem>>, vector<1x8x32xf32>
    %96 = vector.shape_cast %95 : vector<1x8x32xf32> to vector<8x32xf32>
    %97 = vector.extract_strided_slice %96 {offsets = [0, 0], sizes = [8, 8], strides = [1, 1]} : vector<8x32xf32> to vector<8x8xf32>
    %98 = vector.extract_strided_slice %96 {offsets = [0, 8], sizes = [8, 8], strides = [1, 1]} : vector<8x32xf32> to vector<8x8xf32>
    %99 = vector.extract_strided_slice %96 {offsets = [0, 16], sizes = [8, 8], strides = [1, 1]} : vector<8x32xf32> to vector<8x8xf32>
    %100 = vector.extract_strided_slice %96 {offsets = [0, 24], sizes = [8, 8], strides = [1, 1]} : vector<8x32xf32> to vector<8x8xf32>
    %101 = arith.mulf %100, %92 : vector<8x8xf32>
    %102 = vector.shape_cast %101 : vector<8x8xf32> to vector<1x8x8xf32>
    %cst_30 = arith.constant dense<0.000000e+00> : vector<1xf32>
    %103 = vector.multi_reduction <add>, %102, %cst_30 [1, 2] : vector<1x8x8xf32> to vector<1xf32>
    %104 = vector.shape_cast %103 : vector<1xf32> to vector<1x1x1xf32>
    %105 = vector.extract %104[0, 0, 0] : f32 from vector<1x1x1xf32>
    %106 = vector.broadcast %105 : f32 to vector<1x1xf32>
    %cst_31 = arith.constant dense<0.000000e+00> : vector<8x8xf32>
    %107 = tpu.matmul %92, %97, %cst_31 {dimension_numbers = #tpu.dot_dimension_numbers<[1], [0], [0], [1], [0, 0, 1, 1], [], []>, precision = #tpu.contract_precision<fp32>} : vector<8x8xf32>, vector<8x8xf32>, vector<8x8xf32> -> vector<8x8xf32>
    %cst_32 = arith.constant dense<0.000000e+00> : vector<8x8xf32>
    %108 = tpu.matmul %98, %107, %cst_32 {dimension_numbers = #tpu.dot_dimension_numbers<[1], [0], [0], [1], [0, 0, 1, 1], [], []>, precision = #tpu.contract_precision<fp32>} : vector<8x8xf32>, vector<8x8xf32>, vector<8x8xf32> -> vector<8x8xf32>
    %109 = arith.addf %99, %108 : vector<8x8xf32>
    %110 = vector.broadcast %106 : vector<1x1xf32> to vector<8x8xf32>
    %111 = arith.mulf %110, %11 : vector<8x8xf32>
    %112 = arith.addf %109, %111 : vector<8x8xf32>
    %c5_i32 = arith.constant 5 : i32
    %c7_i32_33 = arith.constant 7 : i32
    %113 = arith.subi %c7_i32_33, %c5_i32 : i32
    %114 = arith.index_cast %113 : i32 to index
    %c0_34 = arith.constant 0 : index
    %c0_35 = arith.constant 0 : index
    %115 = vector.load %arg1[%114, %c0_34, %c0_35] : memref<8x8x32xf32, #tpu.memory_space<vmem>>, vector<1x8x32xf32>
    %116 = vector.shape_cast %115 : vector<1x8x32xf32> to vector<8x32xf32>
    %117 = vector.extract_strided_slice %116 {offsets = [0, 0], sizes = [8, 8], strides = [1, 1]} : vector<8x32xf32> to vector<8x8xf32>
    %118 = vector.extract_strided_slice %116 {offsets = [0, 8], sizes = [8, 8], strides = [1, 1]} : vector<8x32xf32> to vector<8x8xf32>
    %119 = vector.extract_strided_slice %116 {offsets = [0, 16], sizes = [8, 8], strides = [1, 1]} : vector<8x32xf32> to vector<8x8xf32>
    %120 = vector.extract_strided_slice %116 {offsets = [0, 24], sizes = [8, 8], strides = [1, 1]} : vector<8x32xf32> to vector<8x8xf32>
    %121 = arith.mulf %120, %112 : vector<8x8xf32>
    %122 = vector.shape_cast %121 : vector<8x8xf32> to vector<1x8x8xf32>
    %cst_36 = arith.constant dense<0.000000e+00> : vector<1xf32>
    %123 = vector.multi_reduction <add>, %122, %cst_36 [1, 2] : vector<1x8x8xf32> to vector<1xf32>
    %124 = vector.shape_cast %123 : vector<1xf32> to vector<1x1x1xf32>
    %125 = vector.extract %124[0, 0, 0] : f32 from vector<1x1x1xf32>
    %126 = vector.broadcast %125 : f32 to vector<1x1xf32>
    %cst_37 = arith.constant dense<0.000000e+00> : vector<8x8xf32>
    %127 = tpu.matmul %112, %117, %cst_37 {dimension_numbers = #tpu.dot_dimension_numbers<[1], [0], [0], [1], [0, 0, 1, 1], [], []>, precision = #tpu.contract_precision<fp32>} : vector<8x8xf32>, vector<8x8xf32>, vector<8x8xf32> -> vector<8x8xf32>
    %cst_38 = arith.constant dense<0.000000e+00> : vector<8x8xf32>
    %128 = tpu.matmul %118, %127, %cst_38 {dimension_numbers = #tpu.dot_dimension_numbers<[1], [0], [0], [1], [0, 0, 1, 1], [], []>, precision = #tpu.contract_precision<fp32>} : vector<8x8xf32>, vector<8x8xf32>, vector<8x8xf32> -> vector<8x8xf32>
    %129 = arith.addf %119, %128 : vector<8x8xf32>
    %130 = vector.broadcast %126 : vector<1x1xf32> to vector<8x8xf32>
    %131 = arith.mulf %130, %11 : vector<8x8xf32>
    %132 = arith.addf %129, %131 : vector<8x8xf32>
    %c6_i32 = arith.constant 6 : i32
    %c7_i32_39 = arith.constant 7 : i32
    %133 = arith.subi %c7_i32_39, %c6_i32 : i32
    %134 = arith.index_cast %133 : i32 to index
    %c0_40 = arith.constant 0 : index
    %c0_41 = arith.constant 0 : index
    %135 = vector.load %arg1[%134, %c0_40, %c0_41] : memref<8x8x32xf32, #tpu.memory_space<vmem>>, vector<1x8x32xf32>
    %136 = vector.shape_cast %135 : vector<1x8x32xf32> to vector<8x32xf32>
    %137 = vector.extract_strided_slice %136 {offsets = [0, 0], sizes = [8, 8], strides = [1, 1]} : vector<8x32xf32> to vector<8x8xf32>
    %138 = vector.extract_strided_slice %136 {offsets = [0, 8], sizes = [8, 8], strides = [1, 1]} : vector<8x32xf32> to vector<8x8xf32>
    %139 = vector.extract_strided_slice %136 {offsets = [0, 16], sizes = [8, 8], strides = [1, 1]} : vector<8x32xf32> to vector<8x8xf32>
    %140 = vector.extract_strided_slice %136 {offsets = [0, 24], sizes = [8, 8], strides = [1, 1]} : vector<8x32xf32> to vector<8x8xf32>
    %141 = arith.mulf %140, %132 : vector<8x8xf32>
    %142 = vector.shape_cast %141 : vector<8x8xf32> to vector<1x8x8xf32>
    %cst_42 = arith.constant dense<0.000000e+00> : vector<1xf32>
    %143 = vector.multi_reduction <add>, %142, %cst_42 [1, 2] : vector<1x8x8xf32> to vector<1xf32>
    %144 = vector.shape_cast %143 : vector<1xf32> to vector<1x1x1xf32>
    %145 = vector.extract %144[0, 0, 0] : f32 from vector<1x1x1xf32>
    %146 = vector.broadcast %145 : f32 to vector<1x1xf32>
    %cst_43 = arith.constant dense<0.000000e+00> : vector<8x8xf32>
    %147 = tpu.matmul %132, %137, %cst_43 {dimension_numbers = #tpu.dot_dimension_numbers<[1], [0], [0], [1], [0, 0, 1, 1], [], []>, precision = #tpu.contract_precision<fp32>} : vector<8x8xf32>, vector<8x8xf32>, vector<8x8xf32> -> vector<8x8xf32>
    %cst_44 = arith.constant dense<0.000000e+00> : vector<8x8xf32>
    %148 = tpu.matmul %138, %147, %cst_44 {dimension_numbers = #tpu.dot_dimension_numbers<[1], [0], [0], [1], [0, 0, 1, 1], [], []>, precision = #tpu.contract_precision<fp32>} : vector<8x8xf32>, vector<8x8xf32>, vector<8x8xf32> -> vector<8x8xf32>
    %149 = arith.addf %139, %148 : vector<8x8xf32>
    %150 = vector.broadcast %146 : vector<1x1xf32> to vector<8x8xf32>
    %151 = arith.mulf %150, %11 : vector<8x8xf32>
    %152 = arith.addf %149, %151 : vector<8x8xf32>
    %c7_i32_45 = arith.constant 7 : i32
    %c7_i32_46 = arith.constant 7 : i32
    %153 = arith.subi %c7_i32_46, %c7_i32_45 : i32
    %154 = arith.index_cast %153 : i32 to index
    %c0_47 = arith.constant 0 : index
    %c0_48 = arith.constant 0 : index
    %155 = vector.load %arg1[%154, %c0_47, %c0_48] : memref<8x8x32xf32, #tpu.memory_space<vmem>>, vector<1x8x32xf32>
    %156 = vector.shape_cast %155 : vector<1x8x32xf32> to vector<8x32xf32>
    %157 = vector.extract_strided_slice %156 {offsets = [0, 0], sizes = [8, 8], strides = [1, 1]} : vector<8x32xf32> to vector<8x8xf32>
    %158 = vector.extract_strided_slice %156 {offsets = [0, 8], sizes = [8, 8], strides = [1, 1]} : vector<8x32xf32> to vector<8x8xf32>
    %159 = vector.extract_strided_slice %156 {offsets = [0, 16], sizes = [8, 8], strides = [1, 1]} : vector<8x32xf32> to vector<8x8xf32>
    %160 = vector.extract_strided_slice %156 {offsets = [0, 24], sizes = [8, 8], strides = [1, 1]} : vector<8x32xf32> to vector<8x8xf32>
    %161 = arith.mulf %160, %152 : vector<8x8xf32>
    %162 = vector.shape_cast %161 : vector<8x8xf32> to vector<1x8x8xf32>
    %cst_49 = arith.constant dense<0.000000e+00> : vector<1xf32>
    %163 = vector.multi_reduction <add>, %162, %cst_49 [1, 2] : vector<1x8x8xf32> to vector<1xf32>
    %164 = vector.shape_cast %163 : vector<1xf32> to vector<1x1x1xf32>
    %165 = vector.extract %164[0, 0, 0] : f32 from vector<1x1x1xf32>
    %166 = vector.broadcast %165 : f32 to vector<1x1xf32>
    %cst_50 = arith.constant dense<0.000000e+00> : vector<8x8xf32>
    %167 = tpu.matmul %152, %157, %cst_50 {dimension_numbers = #tpu.dot_dimension_numbers<[1], [0], [0], [1], [0, 0, 1, 1], [], []>, precision = #tpu.contract_precision<fp32>} : vector<8x8xf32>, vector<8x8xf32>, vector<8x8xf32> -> vector<8x8xf32>
    %cst_51 = arith.constant dense<0.000000e+00> : vector<8x8xf32>
    %168 = tpu.matmul %158, %167, %cst_51 {dimension_numbers = #tpu.dot_dimension_numbers<[1], [0], [0], [1], [0, 0, 1, 1], [], []>, precision = #tpu.contract_precision<fp32>} : vector<8x8xf32>, vector<8x8xf32>, vector<8x8xf32> -> vector<8x8xf32>
    %169 = arith.addf %159, %168 : vector<8x8xf32>
    %170 = vector.broadcast %166 : vector<1x1xf32> to vector<8x8xf32>
    %171 = arith.mulf %170, %11 : vector<8x8xf32>
    %172 = arith.addf %169, %171 : vector<8x8xf32>
    %c8_i32 = arith.constant 8 : i32
    %c0_52 = arith.constant 0 : index
    %c0_53 = arith.constant 0 : index
    %173 = vector.load %arg4[%c0_52, %c0_53] : memref<8x8xf32, #tpu.memory_space<vmem>>, vector<8x8xf32>
    tpu.vector_store %arg4[%c0_52, %c0_53], %172 {strides = array<i32>} : memref<8x8xf32, #tpu.memory_space<vmem>>, vector<8x8xf32>,
    %c0_i32_54 = arith.constant 0 : i32
    %174 = arith.cmpi eq, %arg0, %c0_i32_54 : i32
    %175 = arith.extui %174 : i1 to i32
    %c0_i32_55 = arith.constant 0 : i32
    %176 = arith.cmpi ne, %175, %c0_i32_55 : i32
    scf.if %176 {
      %c0_56 = arith.constant 0 : index
      %c0_57 = arith.constant 0 : index
      %177 = vector.load %arg2[%c0_56, %c0_57] : memref<8x8xf32, #tpu.memory_space<vmem>>, vector<8x8xf32>
      %178 = arith.mulf %177, %172 : vector<8x8xf32>
      %179 = vector.shape_cast %178 : vector<8x8xf32> to vector<1x8x8xf32>
      %cst_58 = arith.constant dense<0.000000e+00> : vector<1xf32>
      %180 = vector.multi_reduction <add>, %179, %cst_58 [1, 2] : vector<1x8x8xf32> to vector<1xf32>
      %181 = vector.shape_cast %180 : vector<1xf32> to vector<1x1x1xf32>
      %182 = vector.extract %181[0, 0, 0] : f32 from vector<1x1x1xf32>
      %183 = vector.broadcast %182 : f32 to vector<1x1xf32>
      %cst_59 = arith.constant 5.000000e-01 : f32
      %184 = vector.broadcast %cst_59 : f32 to vector<1x1xf32>
      %185 = arith.mulf %184, %183 : vector<1x1xf32>
      %c0_60 = arith.constant 0 : index
      %c0_61 = arith.constant 0 : index
      %186 = vector.load %arg3[%c0_60, %c0_61] : memref<1x1xf32, #tpu.memory_space<vmem>>, vector<1x1xf32>
      tpu.vector_store %arg3[%c0_60, %c0_61], %185 {strides = array<i32>} : memref<1x1xf32, #tpu.memory_space<vmem>>, vector<1x1xf32>,
    } else {
    }
    return
  }
  func.func @transform_0(%arg0: i32) -> (i32, i32, i32) {
    %c0_i32 = arith.constant 0 : i32
    %0 = arith.subi %c0_i32, %arg0 : i32
    %c0_i32_0 = arith.constant 0 : i32
    %c0_i32_1 = arith.constant 0 : i32
    %c0_i32_2 = arith.constant 0 : i32
    return %0, %c0_i32_0, %c0_i32_1 : i32, i32, i32
  }
  func.func @transform_1(%arg0: i32) -> (i32, i32) {
    %c0_i32 = arith.constant 0 : i32
    %c0_i32_0 = arith.constant 0 : i32
    %c0_i32_1 = arith.constant 0 : i32
    return %c0_i32, %c0_i32_0 : i32, i32
  }
  func.func @transform_2(%arg0: i32) -> (i32, i32) {
    %c0_i32 = arith.constant 0 : i32
    %c0_i32_0 = arith.constant 0 : i32
    %c0_i32_1 = arith.constant 0 : i32
    return %c0_i32, %c0_i32_0 : i32, i32
  }
}

</mosaic_0001>

<bundles_post_ra>
// kernel: tpu_custom_call.1
= control target key start
LH: loop header
LB: loop body
LE: loop exit
PB: predicated region body
PF: predicated region fallthrough
CT: control target
= control target key end

     0   :  { %7 = vsyncpa [#allocation4], 0  ;;  %s3064_s0 = inlined_call_operand.hbm [shape: f32[8,8,32], index: 0, kind: input, shape index: {}]   ;;  %s3065_s1 = inlined_call_operand.hbm [shape: f32[8,8], index: 1, kind: input, shape index: {}]   ;;  %s3066_s2 = inlined_call_operand.hbm [shape: f32[1,1], index: 2, kind: output, shape index: {}]  }
   0x1   :  { %8 = vsyncpa [#allocation7], 0 }
   0x2   :  { %9 = vsyncpa [#allocation5], 0  ;;  %s18_s11 = sshll.u32 %s3064_s0, 4  ;;  %s2886_s12 = smov [#allocation3]   ;;  %s19_s11 = int_to_ptr.hbm [resolvable:$true] %s18_s11 }
   0x3   :  { %s20_s13 = sshll.u32 %s2886_s12, 4  ;;  %s32_s16 = sshll.u32 %s3065_s1, 4  ;;  %s21_s13 = int_to_ptr.vmem [resolvable:$true] %s20_s13  ;;  %s33_s16 = int_to_ptr.hbm [resolvable:$true] %s32_s16 }
   0x4   :  { %s2887_s17 = smov 128   ;;  %s2888_s18 = smov 8  }
   0x5   :  { %26 = dma.hbm_to_vmem [thread:$0]  %s19_s11, 1024, %s21_s13, [#allocation4], %s2887_s17, %s2887_s17, %s2888_s18  }
   0x6   :  { %s2889_s19 = smov [#allocation6]  }
   0x7   :  { %s34_s20 = sshll.u32 %s2889_s19, 4  ;;  %s35_s20 = int_to_ptr.vmem [resolvable:$true] %s34_s20 }
   0x8   :  { %37 = dma.hbm_to_vmem [thread:$0]  %s33_s16, 128, %s35_s20, [#allocation7]  }
   0x9   :  { %2880 = dma.done.wait [#allocation4], 1024  }
   0xa   :  { %2881 = vsyncadd [#allocation4], 4294966272 }
   0xb   :  { %2882 = dma.done.wait [#allocation7], 128  }
   0xc   :  { %2883 = vsyncadd [#allocation7], 4294967168  ;;  %vm52_vm0 = vcmask 64512   ;;  %v2890_v0 = vmov 0.0   ;;  %v2921_v1 = vld [vmem:[#allocation3 + $0x38] sm:$0xff]  ;;  %s2891_s0 = smov 120   ;;  %v54_v59 = vlaneseq }
   0xd   :  { %53 = vst.msk [vmem:[#allocation2] sm:$0xff] %vm52_vm0, %v2890_v0  ;;  %235 = vrot.lane.b32.xlu0 %v2921_v1, %s2891_s0  ;;  %v103_v3 = vand.u32 4294901760, %v2921_v1  ;;  %s2892_s1 = smov 24   ;;  %s2893_s21 = smov 104   ;;  %vm2756_vm4 = vcmask 0  }
   0xe   :  { %s2894_s22 = smov 16   ;;  %v55_v60 = vshrl.u32 %v54_v59, 7  ;;  %v57_v61 = vand.u32 127, %v54_v59  ;;  %s2895_s24 = smov 112  }
   0xf   :  { %v130_v6 = vsub.f32 %v2921_v1, %v103_v3  ;;  %104 = vmatpush.msra.mxu0 %v103_v3  ;;  %180 = vmatpush.msra.mxu3 %v103_v3  ;;  %s2896_s4 = smov [#allocation8]   ;;  %s2765_s8 = sshll.u32 %s3066_s2, 4  ;;  %s2766_s8 = int_to_ptr.hbm [resolvable:$true] %s2765_s8 }
  0x10   :  { %vm58_vm1 = vcmp.eq.s32.totalorder %v55_v60, 4  ;;  %vm59_vm2 = vcmp.eq.s32.totalorder %v57_v61, 4  ;;  %s2763_s5 = sshll.u32 %s2896_s4, 4  ;;  %s2764_s5 = int_to_ptr.vmem [resolvable:$true] %s2763_s5 }
  0x11   :  { %157 = vmatpush.msra.mxu2 %v130_v6  ;;  %v131_v8 = vand.u32 4294901760, %v130_v6  ;;  %vm60_vm3 = vmand %vm58_vm1, %vm59_vm2 }
  0x12   :  { %v2934_v62 = vsel %vm60_vm3, 1.0, %v2890_v0 }
  0x13   :  { %v132_v10 = vsub.f32 %v130_v6, %v131_v8  ;;  %206 = vmatpush.msrb.mxu0 %v131_v8 }
  0x14   :  { %v63_v2 = vld [vmem:[#allocation2] sm:$0xff] }
  0x15   :  { %v86_v4 = vsel %vm52_vm0, %v63_v2, 0  ;;  %67 = vrot.lane.b32.xlu0 %v63_v2, %s2892_s1  ;;  %v133_v12 = vand.u32 4294901760, %v132_v10 }
  0x16   :  { %v105_v5 = vand.u32 4294901760, %v86_v4 }
  0x17   :  { %134 = vmatpush.msra.mxu1 %v133_v12 }
  0x18   :  { %v106_v7 = vsub.f32 %v86_v4, %v105_v5  ;;  %136 = vmatmul.f32.vlgmr.msra.gmra.mxu1 %v105_v5 }
  0x19   :  { %228 = vmatpush.msrb.mxu1 %v103_v3 }
  0x1a   :  { %160 = vmatmul.f32.vlgmr.msra.gmra.mxu2 %v106_v7  ;;  %v107_v9 = vand.u32 4294901760, %v106_v7 }
  0x1c   :  { %v108_v11 = vsub.f32 %v106_v7, %v107_v9  ;;  %184 = vmatmul.f32.vlgmr.msra.gmra.mxu3 %v107_v9  ;;  %v2941_v7 = vld [vmem:[#allocation3 + $0x30] sm:$0xff] }
  0x1d   :  { %v437_v0 = vand.u32 4294901760, %v2941_v7 }
  0x1e   :  { %v109_v13 = vand.u32 4294901760, %v108_v11 }
  0x1f   :  { %v464_v8 = vsub.f32 %v2941_v7, %v437_v0 }
  0x20   :  { %110 = vmatmul.f32.vlgmr.msra.gmra.mxu0 %v109_v13  ;;  %230 = vmatmul.f32.vlgmr.msrb.gmra.mxu1 %v105_v5 }
  0x21   :  { %v465_v9 = vand.u32 4294901760, %v464_v8 }
  0x28   :  { %208 = vmatmul.f32.vlgmr.msrb.gmra.mxu0 %v105_v5 }
  0x7f   :  { %v236_v14 = vpop.permute.xlu0 %235 }
  0x80   :  { %v237_v17 = vsel %vm52_vm0, %v236_v14, 0 }
  0x81   :  { %v256_v18 = vand.u32 4294901760, %v237_v17 }
  0x83   :  { %v257_v23 = vsub.f32 %v237_v17, %v256_v18 }
  0x85   :  { %v258_v27 = vand.u32 4294901760, %v257_v23 }
  0x87   :  { %v68_v15 = vpop.permute.xlu0 %67  ;;  %v259_v31 = vsub.f32 %v257_v23, %v258_v27 }
  0x88   :  { %v70_v16 = vmul.f32 %v68_v15, %v2921_v1 }
  0x89   :  { %v260_v34 = vand.u32 4294901760, %v259_v31 }
  0x8a   :  { %72 = vrot.lane.b32.xlu1 %v70_v16, %s2893_s21 }
  0x95   :  { %v137_v19 = vpop.f32.mrf.mxu1 }
  0x9d   :  { %v111_v20 = vpop.f32.mrf.mxu0  ;;  %v161_v21 = vpop.f32.mrf.mxu2 }
  0x9e   :  { %v138_v22 = vadd.f32 %v137_v19, %v111_v20  ;;  %v231_v29 = vpop.f32.mrf.mxu1 }
  0x9f   :  { %v185_v24 = vpop.f32.mrf.mxu3 }
  0xa0   :  { %v162_v25 = vadd.f32 %v161_v21, %v138_v22 }
  0xa2   :  { %v186_v26 = vadd.f32 %v185_v24, %v162_v25 }
  0xa5   :  { %v209_v28 = vpop.f32.mrf.mxu0 }
  0xa6   :  { %v210_v30 = vadd.f32 %v209_v28, %v186_v26 }
  0xa8   :  { %v232_v32 = vadd.f32 %v231_v29, %v210_v30 }
  0xaa   :  { %v254_v33 = vand.u32 4294901760, %v232_v32 }
  0xac   :  { %v281_v35 = vsub.f32 %v232_v32, %v254_v33  ;;  %255 = vmatpush.msrb.mxu2 %v254_v33  ;;  %331 = vmatpush.msra.mxu1 %v254_v33 }
  0xad   :  { %261 = vmatmul.f32.vlgmr.msrb.gmra.mxu2 %v260_v34  ;;  %335 = vmatmul.f32.vlgmr.msra.gmra.mxu1 %v258_v27 }
  0xae   :  { %308 = vmatpush.msra.mxu0 %v281_v35  ;;  %v282_v36 = vand.u32 4294901760, %v281_v35 }
  0xaf   :  { %311 = vmatmul.f32.vlgmr.msra.gmra.mxu0 %v257_v23 }
  0xb0   :  { %v283_v37 = vsub.f32 %v281_v35, %v282_v36  ;;  %357 = vmatpush.msra.mxu2 %v282_v36  ;;  %438 = vmatpush.msrb.mxu0 %v437_v0 }
  0xb2   :  { %v284_v38 = vand.u32 4294901760, %v283_v37  ;;  %491 = vmatpush.msrb.mxu2 %v464_v8  ;;  %540 = vmatpush.msra.mxu0 %v465_v9 }
  0xb4   :  { %285 = vmatpush.msrb.mxu3 %v284_v38 }
  0xb5   :  { %287 = vmatmul.f32.vlgmr.msrb.gmra.mxu3 %v256_v18  ;;  %359 = vmatmul.f32.vlgmr.msra.gmra.mxu2 %v256_v18 }
  0xb6   :  { %379 = vmatpush.msra.mxu3 %v254_v33 }
  0xb8   :  { %514 = vmatpush.msrb.mxu3 %v437_v0 }
  0xbd   :  { %381 = vmatmul.f32.vlgmr.msra.gmra.mxu3 %v256_v18 }
  0xfc   :  { %v73_v39 = vpop.permute.xlu1 %72 }
  0xfd   :  { %v76_v40 = vsel %vm52_vm0, %v73_v39, 0.0 }
  0xfe   :  { %77 = vadd.xlane.f32.xlu1 %v76_v40 }
 0x12a   :  { %v336_v46 = vpop.f32.mrf.mxu1 }
 0x12c   :  { %v312_v44 = vpop.f32.mrf.mxu0 }
 0x130   :  { %v262_v41 = vpop.f32.mrf.mxu2 }
 0x138   :  { %v288_v42 = vpop.f32.mrf.mxu3  ;;  %v360_v48 = vpop.f32.mrf.mxu2 }
 0x139   :  { %v289_v43 = vadd.f32 %v288_v42, %v262_v41 }
 0x13b   :  { %v313_v45 = vadd.f32 %v312_v44, %v289_v43 }
 0x13d   :  { %v337_v47 = vadd.f32 %v336_v46, %v313_v45 }
 0x13f   :  { %v361_v49 = vadd.f32 %v360_v48, %v337_v47 }
 0x140   :  { %v382_v50 = vpop.f32.mrf.mxu3 }
 0x141   :  { %v383_v51 = vadd.f32 %v382_v50, %v361_v49 }
 0x143   :  { %386 = vrot.lane.b32.xlu2 %v383_v51, %s2894_s22 }
 0x171   :  { %v78_v52 = vpop.xlane.xlu1 %77 }
 0x172   :  { %v79_v53 = vrot.slane %v78_v52, 4 }
 0x174   :  { %v80_v54 = vadd.f32 %v79_v53, %v78_v52 }
 0x176   :  { %v81_v55 = vrot.slane %v80_v54, 2 }
 0x178   :  { %v82_v56 = vadd.f32 %v81_v55, %v80_v54 }
 0x17a   :  { %v83_v57 = vrot.slane %v82_v56, 1 }
 0x17c   :  { %v84_v58 = vadd.f32 %v83_v57, %v82_v56 }
 0x17e   :  { %2779 = vpush %v84_v58 }
 0x19d   :  { %v387_v3 = vpop.permute.xlu2 %386 }
 0x19e   :  { %v389_v4 = vadd.f32 %v387_v3, %v2921_v1  ;;  %v466_v1 = vsub.f32 %v464_v8, %v465_v9  ;;  %v2958_v8 = vld [vmem:[#allocation3 + $0x28] sm:$0xff] }
 0x19f   :  { %v771_v9 = vand.u32 4294901760, %v2958_v8  ;;  %903 = vrot.lane.b32.xlu1 %v2958_v8, %s2891_s0 }
 0x1a0   :  { %v467_v10 = vand.u32 4294901760, %v466_v1 }
 0x1a1   :  { %v798_v1 = vsub.f32 %v2958_v8, %v771_v9 }
 0x1a2   :  { %468 = vmatpush.msrb.mxu1 %v467_v10 }
 0x1a3   :  { %v799_v10 = vand.u32 4294901760, %v798_v1 }
 0x1a4   :  { %562 = vmatpush.msra.mxu1 %v437_v0 }
 0x1af   :  { %s2780_s23 = spop %2779 }
 0x1b0   :  { %v390_v63 = vstv %s2780_s23 }
 0x1b1   :  { %v391_v2 = vmul.f32 %v2934_v62, %v390_v63 }
 0x1b3   :  { %393 = vrot.lane.b32.xlu2 %v391_v2, %s2894_s22 }
 0x1bb   :  { %569 = vrot.lane.b32.xlu2 %v2941_v7, %s2891_s0 }
 0x20d   :  { %v394_v5 = vpop.permute.xlu2 %393 }
 0x20e   :  { %v396_v6 = vadd.f32 %v394_v5, %v389_v4 }
 0x210   :  { %418 = vrot.lane.b32.xlu0 %v396_v6, %s2895_s24 }
 0x215   :  { %v570_v20 = vpop.permute.xlu2 %569 }
 0x216   :  { %v571_v23 = vsel %vm52_vm0, %v570_v20, 0 }
 0x217   :  { %v590_v24 = vand.u32 4294901760, %v571_v23 }
 0x218   :  { %400 = vrot.lane.b32.xlu0 %v396_v6, %s2888_s18 }
 0x219   :  { %v591_v28 = vsub.f32 %v571_v23, %v590_v24  ;;  %v904_v23 = vpop.permute.xlu1 %903 }
 0x21b   :  { %v592_v31 = vand.u32 4294901760, %v591_v28 }
 0x21d   :  { %v593_v36 = vsub.f32 %v591_v28, %v592_v31 }
 0x21f   :  { %v594_v40 = vand.u32 4294901760, %v593_v36 }
 0x282   :  { %v419_v11 = vpop.permute.xlu0 %418 }
 0x283   :  { %v420_v12 = vsel %vm52_vm0, %v419_v11, 0 }
 0x284   :  { %v439_v13 = vand.u32 4294901760, %v420_v12 }
 0x286   :  { %v440_v14 = vsub.f32 %v420_v12, %v439_v13  ;;  %470 = vmatmul.f32.vlgmr.msrb.gmra.mxu1 %v439_v13 }
 0x288   :  { %v441_v15 = vand.u32 4294901760, %v440_v14  ;;  %494 = vmatmul.f32.vlgmr.msrb.gmra.mxu2 %v440_v14 }
 0x28a   :  { %v442_v16 = vsub.f32 %v440_v14, %v441_v15  ;;  %518 = vmatmul.f32.vlgmr.msrb.gmra.mxu3 %v441_v15  ;;  %v401_v17 = vpop.permute.xlu0 %400 }
 0x28b   :  { %v403_v18 = vmul.f32 %v401_v17, %v2941_v7 }
 0x28c   :  { %v443_v19 = vand.u32 4294901760, %v442_v16 }
 0x28d   :  { %405 = vrot.lane.b32.xlu2 %v403_v18, %s2893_s21 }
 0x28e   :  { %444 = vmatmul.f32.vlgmr.msrb.gmra.mxu0 %v443_v19  ;;  %564 = vmatmul.f32.vlgmr.msra.gmra.mxu1 %v439_v13 }
 0x296   :  { %542 = vmatmul.f32.vlgmr.msra.gmra.mxu0 %v439_v13 }
 0x2e7   :  { %v406_v21 = vpop.permute.xlu2 %405 }
 0x2e8   :  { %v408_v22 = vsel %vm52_vm0, %v406_v21, 0.0 }
 0x2e9   :  { %409 = vadd.xlane.f32.xlu0 %v408_v22 }
 0x303   :  { %v471_v25 = vpop.f32.mrf.mxu1 }
 0x30b   :  { %v445_v26 = vpop.f32.mrf.mxu0  ;;  %v495_v29 = vpop.f32.mrf.mxu2 }
 0x30c   :  { %v472_v27 = vadd.f32 %v471_v25, %v445_v26  ;;  %v565_v37 = vpop.f32.mrf.mxu1 }
 0x30d   :  { %v519_v32 = vpop.f32.mrf.mxu3 }
 0x30e   :  { %v496_v30 = vadd.f32 %v495_v29, %v472_v27 }
 0x310   :  { %v520_v33 = vadd.f32 %v519_v32, %v496_v30 }
 0x313   :  { %v543_v34 = vpop.f32.mrf.mxu0 }
 0x314   :  { %v544_v35 = vadd.f32 %v543_v34, %v520_v33 }
 0x316   :  { %v566_v38 = vadd.f32 %v565_v37, %v544_v35 }
 0x318   :  { %v588_v39 = vand.u32 4294901760, %v566_v38 }
 0x31a   :  { %v615_v41 = vsub.f32 %v566_v38, %v588_v39  ;;  %589 = vmatpush.msra.mxu2 %v588_v39  ;;  %665 = vmatpush.msrb.mxu1 %v588_v39 }
 0x31b   :  { %595 = vmatmul.f32.vlgmr.msra.gmra.mxu2 %v594_v40  ;;  %669 = vmatmul.f32.vlgmr.msrb.gmra.mxu1 %v592_v31 }
 0x31c   :  { %642 = vmatpush.msrb.mxu0 %v615_v41  ;;  %v616_v42 = vand.u32 4294901760, %v615_v41 }
 0x31d   :  { %645 = vmatmul.f32.vlgmr.msrb.gmra.mxu0 %v591_v28 }
 0x31e   :  { %691 = vmatpush.msrb.mxu2 %v616_v42  ;;  %v617_v43 = vsub.f32 %v615_v41, %v616_v42  ;;  %772 = vmatpush.msra.mxu0 %v771_v9 }
 0x320   :  { %v618_v44 = vand.u32 4294901760, %v617_v43  ;;  %825 = vmatpush.msra.mxu2 %v798_v1  ;;  %874 = vmatpush.msrb.mxu0 %v799_v10 }
 0x322   :  { %619 = vmatpush.msra.mxu3 %v618_v44 }
 0x323   :  { %621 = vmatmul.f32.vlgmr.msra.gmra.mxu3 %v590_v24  ;;  %693 = vmatmul.f32.vlgmr.msrb.gmra.mxu2 %v590_v24 }
 0x324   :  { %713 = vmatpush.msrb.mxu3 %v588_v39 }
 0x326   :  { %848 = vmatpush.msra.mxu3 %v771_v9 }
 0x32b   :  { %715 = vmatmul.f32.vlgmr.msrb.gmra.mxu3 %v590_v24  ;;  %v905_v24 = vsel %vm52_vm0, %v904_v23, 0 }
 0x32c   :  { %v924_v25 = vand.u32 4294901760, %v905_v24 }
 0x32e   :  { %v925_v28 = vsub.f32 %v905_v24, %v924_v25 }
 0x330   :  { %v926_v32 = vand.u32 4294901760, %v925_v28 }
 0x332   :  { %v927_v35 = vsub.f32 %v925_v28, %v926_v32 }
 0x334   :  { %v928_v40 = vand.u32 4294901760, %v927_v35 }
 0x35c   :  { %v410_v45 = vpop.xlane.xlu0 %409 }
 0x35d   :  { %v411_v46 = vrot.slane %v410_v45, 4 }
 0x35f   :  { %v412_v47 = vadd.f32 %v411_v46, %v410_v45 }
 0x361   :  { %v413_v48 = vrot.slane %v412_v47, 2 }
 0x363   :  { %v414_v49 = vadd.f32 %v413_v48, %v412_v47 }
 0x365   :  { %v415_v50 = vrot.slane %v414_v49, 1 }
 0x367   :  { %v416_v51 = vadd.f32 %v415_v50, %v414_v49 }
 0x369   :  { %2781 = vpush %v416_v51 }
 0x398   :  { %v670_v57 = vpop.f32.mrf.mxu1 }
 0x39a   :  { %v646_v55 = vpop.f32.mrf.mxu0  ;;  %s2782_s25 = spop %2781 }
 0x39b   :  { %v724_v2 = vstv %s2782_s25 }
 0x39c   :  { %v725_v3 = vmul.f32 %v2934_v62, %v724_v2 }
 0x39e   :  { %v596_v52 = vpop.f32.mrf.mxu2 }
 0x3a6   :  { %v622_v53 = vpop.f32.mrf.mxu3  ;;  %v694_v59 = vpop.f32.mrf.mxu2 }
 0x3a7   :  { %v623_v54 = vadd.f32 %v622_v53, %v596_v52 }
 0x3a9   :  { %v647_v56 = vadd.f32 %v646_v55, %v623_v54 }
 0x3ab   :  { %v671_v58 = vadd.f32 %v670_v57, %v647_v56 }
 0x3ad   :  { %v695_v60 = vadd.f32 %v694_v59, %v671_v58 }
 0x3ae   :  { %v716_v61 = vpop.f32.mrf.mxu3 }
 0x3af   :  { %v717_v63 = vadd.f32 %v716_v61, %v695_v60 }
 0x3b1   :  { %720 = vrot.lane.b32.xlu2 %v717_v63, %s2894_s22 }
 0x3b9   :  { %727 = vrot.lane.b32.xlu2 %v725_v3, %s2894_s22 }
 0x40b   :  { %v721_v4 = vpop.permute.xlu2 %720 }
 0x40c   :  { %v723_v5 = vadd.f32 %v721_v4, %v2941_v7  ;;  %v800_v7 = vsub.f32 %v798_v1, %v799_v10 }
 0x40e   :  { %v801_v11 = vand.u32 4294901760, %v800_v7 }
 0x410   :  { %802 = vmatpush.msra.mxu1 %v801_v11 }
 0x412   :  { %896 = vmatpush.msrb.mxu1 %v771_v9 }
 0x413   :  { %v728_v6 = vpop.permute.xlu2 %727 }
 0x414   :  { %v730_v0 = vadd.f32 %v728_v6, %v723_v5  ;;  %v2972_v5 = vld [vmem:[#allocation3 + $0x20] sm:$0xff] }
 0x415   :  { %v1105_v6 = vand.u32 4294901760, %v2972_v5 }
 0x416   :  { %752 = vrot.lane.b32.xlu2 %v730_v0, %s2895_s24 }
 0x41e   :  { %734 = vrot.lane.b32.xlu2 %v730_v0, %s2888_s18  ;;  %v1132_v0 = vsub.f32 %v2972_v5, %v1105_v6 }
 0x420   :  { %v1133_v11 = vand.u32 4294901760, %v1132_v0 }
 0x470   :  { %v753_v12 = vpop.permute.xlu2 %752 }
 0x471   :  { %v754_v13 = vsel %vm52_vm0, %v753_v12, 0  ;;  %v1134_v12 = vsub.f32 %v1132_v0, %v1133_v11 }
 0x472   :  { %v773_v14 = vand.u32 4294901760, %v754_v13 }
 0x474   :  { %v774_v15 = vsub.f32 %v754_v13, %v773_v14  ;;  %804 = vmatmul.f32.vlgmr.msra.gmra.mxu1 %v773_v14  ;;  %v1135_v13 = vand.u32 4294901760, %v1134_v12 }
 0x476   :  { %v775_v16 = vand.u32 4294901760, %v774_v15  ;;  %828 = vmatmul.f32.vlgmr.msra.gmra.mxu2 %v774_v15 }
 0x478   :  { %v776_v17 = vsub.f32 %v774_v15, %v775_v16  ;;  %852 = vmatmul.f32.vlgmr.msra.gmra.mxu3 %v775_v16  ;;  %v735_v18 = vpop.permute.xlu2 %734 }
 0x479   :  { %v737_v19 = vmul.f32 %v735_v18, %v2958_v8 }
 0x47a   :  { %v777_v20 = vand.u32 4294901760, %v776_v17 }
 0x47b   :  { %739 = vrot.lane.b32.xlu2 %v737_v19, %s2893_s21 }
 0x47c   :  { %778 = vmatmul.f32.vlgmr.msra.gmra.mxu0 %v777_v20  ;;  %898 = vmatmul.f32.vlgmr.msrb.gmra.mxu1 %v773_v14 }
 0x484   :  { %876 = vmatmul.f32.vlgmr.msrb.gmra.mxu0 %v773_v14 }
 0x4d5   :  { %v740_v21 = vpop.permute.xlu2 %739 }
 0x4d6   :  { %v742_v22 = vsel %vm52_vm0, %v740_v21, 0.0 }
 0x4d7   :  { %743 = vadd.xlane.f32.xlu2 %v742_v22 }
 0x4f1   :  { %v805_v26 = vpop.f32.mrf.mxu1 }
 0x4f9   :  { %v779_v27 = vpop.f32.mrf.mxu0  ;;  %v829_v30 = vpop.f32.mrf.mxu2 }
 0x4fa   :  { %v806_v29 = vadd.f32 %v805_v26, %v779_v27  ;;  %v899_v38 = vpop.f32.mrf.mxu1 }
 0x4fb   :  { %v853_v33 = vpop.f32.mrf.mxu3 }
 0x4fc   :  { %v830_v31 = vadd.f32 %v829_v30, %v806_v29 }
 0x4fe   :  { %v854_v34 = vadd.f32 %v853_v33, %v830_v31 }
 0x501   :  { %v877_v36 = vpop.f32.mrf.mxu0 }
 0x502   :  { %v878_v37 = vadd.f32 %v877_v36, %v854_v34 }
 0x504   :  { %v900_v39 = vadd.f32 %v899_v38, %v878_v37 }
 0x506   :  { %v922_v41 = vand.u32 4294901760, %v900_v39 }
 0x508   :  { %v949_v42 = vsub.f32 %v900_v39, %v922_v41  ;;  %923 = vmatpush.msrb.mxu2 %v922_v41  ;;  %999 = vmatpush.msra.mxu1 %v922_v41 }
 0x509   :  { %929 = vmatmul.f32.vlgmr.msrb.gmra.mxu2 %v928_v40  ;;  %1003 = vmatmul.f32.vlgmr.msra.gmra.mxu1 %v926_v32 }
 0x50a   :  { %976 = vmatpush.msra.mxu0 %v949_v42  ;;  %v950_v43 = vand.u32 4294901760, %v949_v42  ;;  %1136 = vmatpush.msrb.mxu1 %v1135_v13 }
 0x50b   :  { %979 = vmatmul.f32.vlgmr.msra.gmra.mxu0 %v925_v28 }
 0x50c   :  { %1025 = vmatpush.msra.mxu2 %v950_v43  ;;  %v951_v44 = vsub.f32 %v949_v42, %v950_v43  ;;  %1106 = vmatpush.msrb.mxu0 %v1105_v6 }
 0x50d   :  { %1230 = vmatpush.msra.mxu1 %v1105_v6 }
 0x50e   :  { %v952_v45 = vand.u32 4294901760, %v951_v44  ;;  %1159 = vmatpush.msrb.mxu2 %v1132_v0  ;;  %1208 = vmatpush.msra.mxu0 %v1133_v11  ;;  %v2989_v0 = vld [vmem:[#allocation3 + $0x18] sm:$0xff] }
 0x510   :  { %953 = vmatpush.msrb.mxu3 %v952_v45 }
 0x511   :  { %955 = vmatmul.f32.vlgmr.msrb.gmra.mxu3 %v924_v25  ;;  %1027 = vmatmul.f32.vlgmr.msra.gmra.mxu2 %v924_v25 }
 0x512   :  { %1047 = vmatpush.msra.mxu3 %v922_v41 }
 0x514   :  { %1182 = vmatpush.msrb.mxu3 %v1105_v6 }
 0x519   :  { %1049 = vmatmul.f32.vlgmr.msra.gmra.mxu3 %v924_v25 }
 0x54a   :  { %v744_v46 = vpop.xlane.xlu2 %743 }
 0x54b   :  { %v745_v47 = vrot.slane %v744_v46, 4 }
 0x54d   :  { %v746_v48 = vadd.f32 %v745_v47, %v744_v46 }
 0x54f   :  { %v747_v49 = vrot.slane %v746_v48, 2 }
 0x551   :  { %v748_v50 = vadd.f32 %v747_v49, %v746_v48 }
 0x553   :  { %v749_v51 = vrot.slane %v748_v50, 1 }
 0x555   :  { %v750_v52 = vadd.f32 %v749_v51, %v748_v50 }
 0x557   :  { %2783 = vpush %v750_v52 }
 0x586   :  { %v1004_v60 = vpop.f32.mrf.mxu1 }
 0x588   :  { %s2784_s26 = spop %2783  ;;  %v980_v58 = vpop.f32.mrf.mxu0 }
 0x589   :  { %v1058_v53 = vstv %s2784_s26 }
 0x58a   :  { %v1059_v54 = vmul.f32 %v2934_v62, %v1058_v53 }
 0x58c   :  { %1061 = vrot.lane.b32.xlu1 %v1059_v54, %s2894_s22  ;;  %v930_v55 = vpop.f32.mrf.mxu2 }
 0x594   :  { %v956_v56 = vpop.f32.mrf.mxu3  ;;  %v1028_v63 = vpop.f32.mrf.mxu2 }
 0x595   :  { %v957_v57 = vadd.f32 %v956_v56, %v930_v55 }
 0x597   :  { %v981_v59 = vadd.f32 %v980_v58, %v957_v57 }
 0x599   :  { %v1005_v61 = vadd.f32 %v1004_v60, %v981_v59 }
 0x59b   :  { %v1029_v2 = vadd.f32 %v1028_v63, %v1005_v61 }
 0x59c   :  { %v1050_v3 = vpop.f32.mrf.mxu3 }
 0x59d   :  { %v1051_v4 = vadd.f32 %v1050_v3, %v1029_v2 }
 0x59f   :  { %1054 = vrot.lane.b32.xlu0 %v1051_v4, %s2894_s22 }
 0x5fe   :  { %v1062_v10 = vpop.permute.xlu1 %1061 }
 0x611   :  { %v1055_v9 = vpop.permute.xlu0 %1054 }
 0x612   :  { %v1057_v1 = vadd.f32 %v1055_v9, %v2958_v8  ;;  %v1439_v9 = vand.u32 4294901760, %v2989_v0 }
 0x614   :  { %v1064_v7 = vadd.f32 %v1062_v10, %v1057_v1  ;;  %v1466_v1 = vsub.f32 %v2989_v0, %v1439_v9 }
 0x616   :  { %1068 = vrot.lane.b32.xlu0 %v1064_v7, %s2888_s18  ;;  %1086 = vrot.lane.b32.xlu1 %v1064_v7, %s2895_s24  ;;  %v1467_v13 = vand.u32 4294901760, %v1466_v1 }
 0x61e   :  { %1237 = vrot.lane.b32.xlu1 %v2972_v5, %s2891_s0 }
 0x688   :  { %v1069_v14 = vpop.permute.xlu0 %1068  ;;  %v1087_v15 = vpop.permute.xlu1 %1086 }
 0x689   :  { %v1071_v16 = vmul.f32 %v1069_v14, %v2972_v5  ;;  %v1088_v8 = vsel %vm52_vm0, %v1087_v15, 0  ;;  %v1468_v14 = vsub.f32 %v1466_v1, %v1467_v13 }
 0x68a   :  { %v1107_v17 = vand.u32 4294901760, %v1088_v8 }
 0x68b   :  { %1073 = vrot.lane.b32.xlu1 %v1071_v16, %s2893_s21  ;;  %v1469_v15 = vand.u32 4294901760, %v1468_v14 }
 0x68c   :  { %v1108_v18 = vsub.f32 %v1088_v8, %v1107_v17  ;;  %1138 = vmatmul.f32.vlgmr.msrb.gmra.mxu1 %v1107_v17 }
 0x68e   :  { %v1109_v19 = vand.u32 4294901760, %v1108_v18  ;;  %1162 = vmatmul.f32.vlgmr.msrb.gmra.mxu2 %v1108_v18 }
 0x690   :  { %v1110_v20 = vsub.f32 %v1108_v18, %v1109_v19  ;;  %1186 = vmatmul.f32.vlgmr.msrb.gmra.mxu3 %v1109_v19  ;;  %v1238_v22 = vpop.permute.xlu1 %1237 }
 0x691   :  { %v1239_v25 = vsel %vm52_vm0, %v1238_v22, 0 }
 0x692   :  { %v1111_v21 = vand.u32 4294901760, %v1110_v20  ;;  %v1258_v26 = vand.u32 4294901760, %v1239_v25 }
 0x694   :  { %1112 = vmatmul.f32.vlgmr.msrb.gmra.mxu0 %v1111_v21  ;;  %1232 = vmatmul.f32.vlgmr.msra.gmra.mxu1 %v1107_v17  ;;  %v1259_v30 = vsub.f32 %v1239_v25, %v1258_v26 }
 0x696   :  { %v1260_v33 = vand.u32 4294901760, %v1259_v30 }
 0x698   :  { %v1261_v38 = vsub.f32 %v1259_v30, %v1260_v33 }
 0x69a   :  { %v1262_v42 = vand.u32 4294901760, %v1261_v38 }
 0x69c   :  { %1210 = vmatmul.f32.vlgmr.msra.gmra.mxu0 %v1107_v17 }
 0x6fd   :  { %v1074_v23 = vpop.permute.xlu1 %1073 }
 0x6fe   :  { %v1076_v24 = vsel %vm52_vm0, %v1074_v23, 0.0 }
 0x6ff   :  { %1077 = vadd.xlane.f32.xlu0 %v1076_v24 }
 0x709   :  { %v1139_v27 = vpop.f32.mrf.mxu1 }
 0x711   :  { %v1113_v28 = vpop.f32.mrf.mxu0  ;;  %v1163_v31 = vpop.f32.mrf.mxu2 }
 0x712   :  { %v1140_v29 = vadd.f32 %v1139_v27, %v1113_v28  ;;  %v1233_v39 = vpop.f32.mrf.mxu1 }
 0x713   :  { %v1187_v34 = vpop.f32.mrf.mxu3 }
 0x714   :  { %v1164_v32 = vadd.f32 %v1163_v31, %v1140_v29 }
 0x716   :  { %v1188_v35 = vadd.f32 %v1187_v34, %v1164_v32 }
 0x719   :  { %v1211_v36 = vpop.f32.mrf.mxu0 }
 0x71a   :  { %v1212_v37 = vadd.f32 %v1211_v36, %v1188_v35 }
 0x71c   :  { %v1234_v40 = vadd.f32 %v1233_v39, %v1212_v37 }
 0x71e   :  { %v1256_v41 = vand.u32 4294901760, %v1234_v40 }
 0x720   :  { %v1283_v43 = vsub.f32 %v1234_v40, %v1256_v41  ;;  %1257 = vmatpush.msra.mxu2 %v1256_v41  ;;  %1333 = vmatpush.msrb.mxu1 %v1256_v41 }
 0x721   :  { %1263 = vmatmul.f32.vlgmr.msra.gmra.mxu2 %v1262_v42  ;;  %1337 = vmatmul.f32.vlgmr.msrb.gmra.mxu1 %v1260_v33 }
 0x722   :  { %1310 = vmatpush.msrb.mxu0 %v1283_v43  ;;  %v1284_v44 = vand.u32 4294901760, %v1283_v43  ;;  %1470 = vmatpush.msra.mxu1 %v1469_v15 }
 0x723   :  { %1313 = vmatmul.f32.vlgmr.msrb.gmra.mxu0 %v1259_v30 }
 0x724   :  { %1359 = vmatpush.msrb.mxu2 %v1284_v44  ;;  %v1285_v45 = vsub.f32 %v1283_v43, %v1284_v44  ;;  %1440 = vmatpush.msra.mxu0 %v1439_v9 }
 0x725   :  { %1564 = vmatpush.msrb.mxu1 %v1439_v9 }
 0x726   :  { %v1286_v46 = vand.u32 4294901760, %v1285_v45  ;;  %1493 = vmatpush.msra.mxu2 %v1466_v1  ;;  %1542 = vmatpush.msrb.mxu0 %v1467_v13 }
 0x728   :  { %1287 = vmatpush.msra.mxu3 %v1286_v46 }
 0x729   :  { %1289 = vmatmul.f32.vlgmr.msra.gmra.mxu3 %v1258_v26  ;;  %1361 = vmatmul.f32.vlgmr.msrb.gmra.mxu2 %v1258_v26 }
 0x72a   :  { %1381 = vmatpush.msrb.mxu3 %v1256_v41 }
 0x72c   :  { %1516 = vmatpush.msra.mxu3 %v1439_v9 }
 0x731   :  { %1383 = vmatmul.f32.vlgmr.msrb.gmra.mxu3 %v1258_v26 }
 0x772   :  { %v1078_v47 = vpop.xlane.xlu0 %1077 }
 0x773   :  { %v1079_v48 = vrot.slane %v1078_v47, 4 }
 0x775   :  { %v1080_v49 = vadd.f32 %v1079_v48, %v1078_v47 }
 0x777   :  { %v1081_v50 = vrot.slane %v1080_v49, 2 }
 0x779   :  { %v1082_v51 = vadd.f32 %v1081_v50, %v1080_v49 }
 0x77b   :  { %v1083_v52 = vrot.slane %v1082_v51, 1 }
 0x77d   :  { %v1084_v53 = vadd.f32 %v1083_v52, %v1082_v51 }
 0x77f   :  { %2785 = vpush %v1084_v53 }
 0x79e   :  { %v1338_v59 = vpop.f32.mrf.mxu1 }
 0x7a0   :  { %v1314_v57 = vpop.f32.mrf.mxu0 }
 0x7a4   :  { %v1264_v54 = vpop.f32.mrf.mxu2 }
 0x7ac   :  { %v1290_v55 = vpop.f32.mrf.mxu3  ;;  %v1362_v63 = vpop.f32.mrf.mxu2 }
 0x7ad   :  { %v1291_v56 = vadd.f32 %v1290_v55, %v1264_v54 }
 0x7af   :  { %v1315_v58 = vadd.f32 %v1314_v57, %v1291_v56 }
 0x7b0   :  { %s2786_s27 = spop %2785 }
 0x7b1   :  { %v1339_v60 = vadd.f32 %v1338_v59, %v1315_v58  ;;  %v1392_v61 = vstv %s2786_s27 }
 0x7b2   :  { %v1393_v2 = vmul.f32 %v2934_v62, %v1392_v61 }
 0x7b3   :  { %v1363_v3 = vadd.f32 %v1362_v63, %v1339_v60 }
 0x7b4   :  { %v1384_v4 = vpop.f32.mrf.mxu3  ;;  %1395 = vrot.lane.b32.xlu2 %v1393_v2, %s2894_s22 }
 0x7b5   :  { %v1385_v6 = vadd.f32 %v1384_v4, %v1363_v3 }
 0x7b7   :  { %1388 = vrot.lane.b32.xlu1 %v1385_v6, %s2894_s22 }
 0x80e   :  { %v1396_v11 = vpop.permute.xlu2 %1395 }
 0x829   :  { %v1389_v10 = vpop.permute.xlu1 %1388 }
 0x82a   :  { %v1391_v7 = vadd.f32 %v1389_v10, %v2972_v5 }
 0x82c   :  { %v1398_v12 = vadd.f32 %v1396_v11, %v1391_v7 }
 0x82e   :  { %1420 = vrot.lane.b32.xlu1 %v1398_v12, %s2895_s24 }
 0x836   :  { %1571 = vrot.lane.b32.xlu1 %v2989_v0, %s2891_s0 }
 0x83e   :  { %1402 = vrot.lane.b32.xlu1 %v1398_v12, %s2888_s18  ;;  %v3009_v12 = vld [vmem:[#allocation3 + $0x10] sm:$0xff] }
 0x83f   :  { %v1773_v13 = vand.u32 4294901760, %v3009_v12 }
 0x841   :  { %v1800_v14 = vsub.f32 %v3009_v12, %v1773_v13 }
 0x843   :  { %v1801_v15 = vand.u32 4294901760, %v1800_v14 }
 0x8a0   :  { %v1421_v16 = vpop.permute.xlu1 %1420 }
 0x8a1   :  { %v1422_v8 = vsel %vm52_vm0, %v1421_v16, 0 }
 0x8a2   :  { %v1441_v17 = vand.u32 4294901760, %v1422_v8 }
 0x8a4   :  { %v1442_v5 = vsub.f32 %v1422_v8, %v1441_v17  ;;  %1472 = vmatmul.f32.vlgmr.msra.gmra.mxu1 %v1441_v17 }
 0x8a6   :  { %v1443_v18 = vand.u32 4294901760, %v1442_v5  ;;  %1496 = vmatmul.f32.vlgmr.msra.gmra.mxu2 %v1442_v5 }
 0x8a8   :  { %v1444_v19 = vsub.f32 %v1442_v5, %v1443_v18  ;;  %1520 = vmatmul.f32.vlgmr.msra.gmra.mxu3 %v1443_v18  ;;  %v1572_v20 = vpop.permute.xlu1 %1571 }
 0x8a9   :  { %v1573_v26 = vsel %vm52_vm0, %v1572_v20, 0 }
 0x8aa   :  { %v1445_v21 = vand.u32 4294901760, %v1444_v19  ;;  %v1592_v27 = vand.u32 4294901760, %v1573_v26 }
 0x8ac   :  { %1446 = vmatmul.f32.vlgmr.msra.gmra.mxu0 %v1445_v21  ;;  %1566 = vmatmul.f32.vlgmr.msrb.gmra.mxu1 %v1441_v17  ;;  %v1593_v31 = vsub.f32 %v1573_v26, %v1592_v27 }
 0x8ae   :  { %v1594_v34 = vand.u32 4294901760, %v1593_v31 }
 0x8b0   :  { %v1403_v22 = vpop.permute.xlu1 %1402  ;;  %v1595_v39 = vsub.f32 %v1593_v31, %v1594_v34 }
 0x8b1   :  { %v1405_v23 = vmul.f32 %v1403_v22, %v2989_v0 }
 0x8b2   :  { %v1596_v43 = vand.u32 4294901760, %v1595_v39 }
 0x8b3   :  { %1407 = vrot.lane.b32.xlu2 %v1405_v23, %s2893_s21 }
 0x8b4   :  { %1544 = vmatmul.f32.vlgmr.msrb.gmra.mxu0 %v1441_v17 }
 0x90d   :  { %v1408_v24 = vpop.permute.xlu2 %1407 }
 0x90e   :  { %v1410_v25 = vsel %vm52_vm0, %v1408_v24, 0.0 }
 0x90f   :  { %1411 = vadd.xlane.f32.xlu1 %v1410_v25 }
 0x921   :  { %v1473_v28 = vpop.f32.mrf.mxu1 }
 0x929   :  { %v1447_v29 = vpop.f32.mrf.mxu0  ;;  %v1497_v32 = vpop.f32.mrf.mxu2 }
 0x92a   :  { %v1474_v30 = vadd.f32 %v1473_v28, %v1447_v29  ;;  %v1567_v40 = vpop.f32.mrf.mxu1 }
 0x92b   :  { %v1521_v35 = vpop.f32.mrf.mxu3 }
 0x92c   :  { %v1498_v33 = vadd.f32 %v1497_v32, %v1474_v30 }
 0x92e   :  { %v1522_v36 = vadd.f32 %v1521_v35, %v1498_v33 }
 0x931   :  { %v1545_v37 = vpop.f32.mrf.mxu0 }
 0x932   :  { %v1546_v38 = vadd.f32 %v1545_v37, %v1522_v36 }
 0x934   :  { %v1568_v41 = vadd.f32 %v1567_v40, %v1546_v38 }
 0x936   :  { %v1590_v42 = vand.u32 4294901760, %v1568_v41 }
 0x938   :  { %v1617_v44 = vsub.f32 %v1568_v41, %v1590_v42  ;;  %1591 = vmatpush.msrb.mxu2 %v1590_v42  ;;  %1667 = vmatpush.msra.mxu1 %v1590_v42 }
 0x939   :  { %1597 = vmatmul.f32.vlgmr.msrb.gmra.mxu2 %v1596_v43  ;;  %1671 = vmatmul.f32.vlgmr.msra.gmra.mxu1 %v1594_v34 }
 0x93a   :  { %1644 = vmatpush.msra.mxu0 %v1617_v44  ;;  %v1618_v45 = vand.u32 4294901760, %v1617_v44 }
 0x93b   :  { %1647 = vmatmul.f32.vlgmr.msra.gmra.mxu0 %v1593_v31 }
 0x93c   :  { %1693 = vmatpush.msra.mxu2 %v1618_v45  ;;  %v1619_v46 = vsub.f32 %v1617_v44, %v1618_v45  ;;  %1774 = vmatpush.msrb.mxu0 %v1773_v13 }
 0x93e   :  { %v1620_v47 = vand.u32 4294901760, %v1619_v46  ;;  %1827 = vmatpush.msrb.mxu2 %v1800_v14  ;;  %1876 = vmatpush.msra.mxu0 %v1801_v15 }
 0x940   :  { %1621 = vmatpush.msrb.mxu3 %v1620_v47 }
 0x941   :  { %1623 = vmatmul.f32.vlgmr.msrb.gmra.mxu3 %v1592_v27  ;;  %1695 = vmatmul.f32.vlgmr.msra.gmra.mxu2 %v1592_v27 }
 0x942   :  { %1715 = vmatpush.msra.mxu3 %v1590_v42 }
 0x944   :  { %1850 = vmatpush.msrb.mxu3 %v1773_v13 }
 0x949   :  { %1717 = vmatmul.f32.vlgmr.msra.gmra.mxu3 %v1592_v27 }
 0x982   :  { %v1412_v48 = vpop.xlane.xlu1 %1411 }
 0x983   :  { %v1413_v49 = vrot.slane %v1412_v48, 4 }
 0x985   :  { %v1414_v50 = vadd.f32 %v1413_v49, %v1412_v48 }
 0x987   :  { %v1415_v51 = vrot.slane %v1414_v50, 2 }
 0x989   :  { %v1416_v52 = vadd.f32 %v1415_v51, %v1414_v50 }
 0x98b   :  { %v1417_v53 = vrot.slane %v1416_v52, 1 }
 0x98d   :  { %v1418_v54 = vadd.f32 %v1417_v53, %v1416_v52 }
 0x98f   :  { %2787 = vpush %v1418_v54 }
 0x9b6   :  { %v1672_v63 = vpop.f32.mrf.mxu1 }
 0x9b8   :  { %v1648_v60 = vpop.f32.mrf.mxu0 }
 0x9bc   :  { %v1598_v55 = vpop.f32.mrf.mxu2 }
 0x9c0   :  { %s2788_s28 = spop %2787 }
 0x9c1   :  { %v1726_v56 = vstv %s2788_s28 }
 0x9c2   :  { %v1727_v57 = vmul.f32 %v2934_v62, %v1726_v56 }
 0x9c4   :  { %v1624_v58 = vpop.f32.mrf.mxu3  ;;  %1729 = vrot.lane.b32.xlu2 %v1727_v57, %s2894_s22  ;;  %v1696_v3 = vpop.f32.mrf.mxu2 }
 0x9c5   :  { %v1625_v59 = vadd.f32 %v1624_v58, %v1598_v55 }
 0x9c7   :  { %v1649_v61 = vadd.f32 %v1648_v60, %v1625_v59 }
 0x9c9   :  { %v1673_v2 = vadd.f32 %v1672_v63, %v1649_v61 }
 0x9cb   :  { %v1697_v4 = vadd.f32 %v1696_v3, %v1673_v2 }
 0x9cc   :  { %v1718_v6 = vpop.f32.mrf.mxu3 }
 0x9cd   :  { %v1719_v9 = vadd.f32 %v1718_v6, %v1697_v4 }
 0x9cf   :  { %1722 = vrot.lane.b32.xlu0 %v1719_v9, %s2894_s22 }
 0xa1e   :  { %v1730_v7 = vpop.permute.xlu2 %1729 }
 0xa41   :  { %v1723_v1 = vpop.permute.xlu0 %1722 }
 0xa42   :  { %v1725_v10 = vadd.f32 %v1723_v1, %v2989_v0  ;;  %v1802_v0 = vsub.f32 %v1800_v14, %v1801_v15 }
 0xa44   :  { %v1732_v11 = vadd.f32 %v1730_v7, %v1725_v10  ;;  %v1803_v16 = vand.u32 4294901760, %v1802_v0  ;;  %v3023_v10 = vld [vmem:[#allocation3 + $0x8] sm:$0xff] }
 0xa45   :  { %v2107_v7 = vand.u32 4294901760, %v3023_v10 }
 0xa46   :  { %1736 = vrot.lane.b32.xlu0 %v1732_v11, %s2888_s18  ;;  %1754 = vrot.lane.b32.xlu2 %v1732_v11, %s2895_s24 }
 0xa47   :  { %1804 = vmatpush.msrb.mxu1 %v1803_v16  ;;  %v2134_v11 = vsub.f32 %v3023_v10, %v2107_v7 }
 0xa49   :  { %1898 = vmatpush.msra.mxu1 %v1773_v13  ;;  %v2135_v16 = vand.u32 4294901760, %v2134_v11 }
 0xa4e   :  { %1905 = vrot.lane.b32.xlu2 %v3009_v12, %s2891_s0 }
 0xaa0   :  { %v1755_v8 = vpop.permute.xlu2 %1754 }
 0xaa1   :  { %v1756_v17 = vsel %vm52_vm0, %v1755_v8, 0  ;;  %v2136_v8 = vsub.f32 %v2134_v11, %v2135_v16 }
 0xaa2   :  { %v1775_v5 = vand.u32 4294901760, %v1756_v17 }
 0xaa4   :  { %v1776_v18 = vsub.f32 %v1756_v17, %v1775_v5  ;;  %1806 = vmatmul.f32.vlgmr.msrb.gmra.mxu1 %v1775_v5  ;;  %v2137_v17 = vand.u32 4294901760, %v2136_v8 }
 0xaa6   :  { %v1777_v19 = vand.u32 4294901760, %v1776_v18  ;;  %1830 = vmatmul.f32.vlgmr.msrb.gmra.mxu2 %v1776_v18 }
 0xaa8   :  { %v1778_v20 = vsub.f32 %v1776_v18, %v1777_v19  ;;  %1854 = vmatmul.f32.vlgmr.msrb.gmra.mxu3 %v1777_v19  ;;  %v1906_v24 = vpop.permute.xlu2 %1905 }
 0xaa9   :  { %v1907_v27 = vsel %vm52_vm0, %v1906_v24, 0 }
 0xaaa   :  { %v1779_v21 = vand.u32 4294901760, %v1778_v20  ;;  %v1926_v28 = vand.u32 4294901760, %v1907_v27 }
 0xaac   :  { %1780 = vmatmul.f32.vlgmr.msrb.gmra.mxu0 %v1779_v21  ;;  %1900 = vmatmul.f32.vlgmr.msra.gmra.mxu1 %v1775_v5  ;;  %v1927_v32 = vsub.f32 %v1907_v27, %v1926_v28 }
 0xaae   :  { %v1928_v35 = vand.u32 4294901760, %v1927_v32 }
 0xab0   :  { %v1929_v40 = vsub.f32 %v1927_v32, %v1928_v35 }
 0xab2   :  { %v1930_v44 = vand.u32 4294901760, %v1929_v40 }
 0xab4   :  { %1878 = vmatmul.f32.vlgmr.msra.gmra.mxu0 %v1775_v5 }
 0xab8   :  { %v1737_v22 = vpop.permute.xlu0 %1736 }
 0xab9   :  { %v1739_v23 = vmul.f32 %v1737_v22, %v3009_v12 }
 0xabb   :  { %1741 = vrot.lane.b32.xlu2 %v1739_v23, %s2893_s21 }
 0xb15   :  { %v1742_v25 = vpop.permute.xlu2 %1741 }
 0xb16   :  { %v1744_v26 = vsel %vm52_vm0, %v1742_v25, 0.0 }
 0xb17   :  { %1745 = vadd.xlane.f32.xlu0 %v1744_v26 }
 0xb21   :  { %v1807_v29 = vpop.f32.mrf.mxu1 }
 0xb29   :  { %v1781_v30 = vpop.f32.mrf.mxu0  ;;  %v1831_v33 = vpop.f32.mrf.mxu2 }
 0xb2a   :  { %v1808_v31 = vadd.f32 %v1807_v29, %v1781_v30  ;;  %v1901_v41 = vpop.f32.mrf.mxu1 }
 0xb2b   :  { %v1855_v36 = vpop.f32.mrf.mxu3 }
 0xb2c   :  { %v1832_v34 = vadd.f32 %v1831_v33, %v1808_v31 }
 0xb2e   :  { %v1856_v37 = vadd.f32 %v1855_v36, %v1832_v34 }
 0xb31   :  { %v1879_v38 = vpop.f32.mrf.mxu0 }
 0xb32   :  { %v1880_v39 = vadd.f32 %v1879_v38, %v1856_v37 }
 0xb34   :  { %v1902_v42 = vadd.f32 %v1901_v41, %v1880_v39 }
 0xb36   :  { %v1924_v43 = vand.u32 4294901760, %v1902_v42 }
 0xb38   :  { %v1951_v45 = vsub.f32 %v1902_v42, %v1924_v43  ;;  %1925 = vmatpush.msra.mxu2 %v1924_v43  ;;  %2001 = vmatpush.msrb.mxu1 %v1924_v43 }
 0xb39   :  { %1931 = vmatmul.f32.vlgmr.msra.gmra.mxu2 %v1930_v44  ;;  %2005 = vmatmul.f32.vlgmr.msrb.gmra.mxu1 %v1928_v35 }
 0xb3a   :  { %1978 = vmatpush.msrb.mxu0 %v1951_v45  ;;  %v1952_v46 = vand.u32 4294901760, %v1951_v45  ;;  %2138 = vmatpush.msra.mxu1 %v2137_v17 }
 0xb3b   :  { %1981 = vmatmul.f32.vlgmr.msrb.gmra.mxu0 %v1927_v32 }
 0xb3c   :  { %2027 = vmatpush.msrb.mxu2 %v1952_v46  ;;  %v1953_v47 = vsub.f32 %v1951_v45, %v1952_v46  ;;  %2108 = vmatpush.msra.mxu0 %v2107_v7 }
 0xb3d   :  { %2232 = vmatpush.msrb.mxu1 %v2107_v7 }
 0xb3e   :  { %v1954_v48 = vand.u32 4294901760, %v1953_v47  ;;  %2161 = vmatpush.msra.mxu2 %v2134_v11  ;;  %2210 = vmatpush.msrb.mxu0 %v2135_v16  ;;  %v3040_v11 = vld [vmem:[#allocation3] sm:$0xff] }
 0xb40   :  { %1955 = vmatpush.msra.mxu3 %v1954_v48 }
 0xb41   :  { %1957 = vmatmul.f32.vlgmr.msra.gmra.mxu3 %v1926_v28  ;;  %2029 = vmatmul.f32.vlgmr.msrb.gmra.mxu2 %v1926_v28 }
 0xb42   :  { %2049 = vmatpush.msrb.mxu3 %v1924_v43 }
 0xb44   :  { %2184 = vmatpush.msra.mxu3 %v2107_v7 }
 0xb49   :  { %2051 = vmatmul.f32.vlgmr.msrb.gmra.mxu3 %v1926_v28 }
 0xb8a   :  { %v1746_v49 = vpop.xlane.xlu0 %1745 }
 0xb8b   :  { %v1747_v50 = vrot.slane %v1746_v49, 4 }
 0xb8d   :  { %v1748_v51 = vadd.f32 %v1747_v50, %v1746_v49 }
 0xb8f   :  { %v1749_v52 = vrot.slane %v1748_v51, 2 }
 0xb91   :  { %v1750_v53 = vadd.f32 %v1749_v52, %v1748_v51 }
 0xb93   :  { %v1751_v54 = vrot.slane %v1750_v53, 1 }
 0xb95   :  { %v1752_v55 = vadd.f32 %v1751_v54, %v1750_v53 }
 0xb97   :  { %2789 = vpush %v1752_v55 }
 0xbb6   :  { %v2006_v61 = vpop.f32.mrf.mxu1 }
 0xbb8   :  { %v1982_v59 = vpop.f32.mrf.mxu0 }
 0xbbc   :  { %v1932_v56 = vpop.f32.mrf.mxu2 }
 0xbc4   :  { %v1958_v57 = vpop.f32.mrf.mxu3  ;;  %v2030_v3 = vpop.f32.mrf.mxu2 }
 0xbc5   :  { %v1959_v58 = vadd.f32 %v1958_v57, %v1932_v56 }
 0xbc7   :  { %v1983_v60 = vadd.f32 %v1982_v59, %v1959_v58 }
 0xbc8   :  { %s2790_s29 = spop %2789 }
 0xbc9   :  { %v2007_v63 = vadd.f32 %v2006_v61, %v1983_v60  ;;  %v2060_v2 = vstv %s2790_s29 }
 0xbca   :  { %v2061_v4 = vmul.f32 %v2934_v62, %v2060_v2 }
 0xbcb   :  { %v2031_v6 = vadd.f32 %v2030_v3, %v2007_v63 }
 0xbcc   :  { %v2052_v9 = vpop.f32.mrf.mxu3  ;;  %2063 = vrot.lane.b32.xlu1 %v2061_v4, %s2894_s22 }
 0xbcd   :  { %v2053_v1 = vadd.f32 %v2052_v9, %v2031_v6 }
 0xbcf   :  { %2056 = vrot.lane.b32.xlu2 %v2053_v1, %s2894_s22 }
 0xc29   :  { %v2057_v13 = vpop.permute.xlu2 %2056 }
 0xc2a   :  { %v2059_v14 = vadd.f32 %v2057_v13, %v3009_v12  ;;  %v2440_v13 = vand.u32 4294901760, %v3040_v11 }
 0xc3e   :  { %v2064_v15 = vpop.permute.xlu1 %2063 }
 0xc3f   :  { %v2066_v0 = vadd.f32 %v2064_v15, %v2059_v14  ;;  %v2467_v14 = vsub.f32 %v3040_v11, %v2440_v13 }
 0xc41   :  { %2088 = vrot.lane.b32.xlu2 %v2066_v0, %s2895_s24  ;;  %v2468_v17 = vand.u32 4294901760, %v2467_v14 }
 0xc49   :  { %2239 = vrot.lane.b32.xlu2 %v3023_v10, %s2891_s0 }
 0xc51   :  { %2070 = vrot.lane.b32.xlu2 %v2066_v0, %s2888_s18 }
 0xc9b   :  { %v2089_v5 = vpop.permute.xlu2 %2088 }
 0xc9c   :  { %v2090_v18 = vsel %vm52_vm0, %v2089_v5, 0  ;;  %v2469_v5 = vsub.f32 %v2467_v14, %v2468_v17 }
 0xc9d   :  { %v2109_v19 = vand.u32 4294901760, %v2090_v18 }
 0xc9f   :  { %v2110_v12 = vsub.f32 %v2090_v18, %v2109_v19  ;;  %2140 = vmatmul.f32.vlgmr.msra.gmra.mxu1 %v2109_v19  ;;  %v2470_v18 = vand.u32 4294901760, %v2469_v5 }
 0xca1   :  { %v2111_v20 = vand.u32 4294901760, %v2110_v12  ;;  %2164 = vmatmul.f32.vlgmr.msra.gmra.mxu2 %v2110_v12 }
 0xca3   :  { %v2112_v21 = vsub.f32 %v2110_v12, %v2111_v20  ;;  %2188 = vmatmul.f32.vlgmr.msra.gmra.mxu3 %v2111_v20  ;;  %v2240_v22 = vpop.permute.xlu2 %2239 }
 0xca4   :  { %v2241_v26 = vsel %vm52_vm0, %v2240_v22, 0 }
 0xca5   :  { %v2113_v23 = vand.u32 4294901760, %v2112_v21  ;;  %v2260_v29 = vand.u32 4294901760, %v2241_v26 }
 0xca7   :  { %2114 = vmatmul.f32.vlgmr.msra.gmra.mxu0 %v2113_v23  ;;  %2234 = vmatmul.f32.vlgmr.msrb.gmra.mxu1 %v2109_v19  ;;  %v2261_v33 = vsub.f32 %v2241_v26, %v2260_v29 }
 0xca9   :  { %v2262_v36 = vand.u32 4294901760, %v2261_v33 }
 0xcab   :  { %v2071_v24 = vpop.permute.xlu2 %2070  ;;  %v2263_v41 = vsub.f32 %v2261_v33, %v2262_v36 }
 0xcac   :  { %v2073_v25 = vmul.f32 %v2071_v24, %v3023_v10 }
 0xcad   :  { %v2264_v45 = vand.u32 4294901760, %v2263_v41 }
 0xcae   :  { %2075 = vrot.lane.b32.xlu1 %v2073_v25, %s2893_s21 }
 0xcaf   :  { %2212 = vmatmul.f32.vlgmr.msrb.gmra.mxu0 %v2109_v19 }
 0xd1c   :  { %v2141_v30 = vpop.f32.mrf.mxu1 }
 0xd20   :  { %v2076_v27 = vpop.permute.xlu1 %2075 }
 0xd21   :  { %v2078_v28 = vsel %vm52_vm0, %v2076_v27, 0.0 }
 0xd22   :  { %2079 = vadd.xlane.f32.xlu2 %v2078_v28 }
 0xd24   :  { %v2115_v31 = vpop.f32.mrf.mxu0  ;;  %v2165_v34 = vpop.f32.mrf.mxu2 }
 0xd25   :  { %v2142_v32 = vadd.f32 %v2141_v30, %v2115_v31  ;;  %v2235_v42 = vpop.f32.mrf.mxu1 }
 0xd26   :  { %v2189_v37 = vpop.f32.mrf.mxu3 }
 0xd27   :  { %v2166_v35 = vadd.f32 %v2165_v34, %v2142_v32 }
 0xd29   :  { %v2190_v38 = vadd.f32 %v2189_v37, %v2166_v35 }
 0xd2c   :  { %v2213_v39 = vpop.f32.mrf.mxu0 }
 0xd2d   :  { %v2214_v40 = vadd.f32 %v2213_v39, %v2190_v38 }
 0xd2f   :  { %v2236_v43 = vadd.f32 %v2235_v42, %v2214_v40 }
 0xd31   :  { %v2258_v44 = vand.u32 4294901760, %v2236_v43 }
 0xd33   :  { %v2285_v46 = vsub.f32 %v2236_v43, %v2258_v44  ;;  %2259 = vmatpush.msrb.mxu2 %v2258_v44  ;;  %2335 = vmatpush.msra.mxu1 %v2258_v44 }
 0xd34   :  { %2265 = vmatmul.f32.vlgmr.msrb.gmra.mxu2 %v2264_v45  ;;  %2339 = vmatmul.f32.vlgmr.msra.gmra.mxu1 %v2262_v36 }
 0xd35   :  { %2312 = vmatpush.msra.mxu0 %v2285_v46  ;;  %v2286_v47 = vand.u32 4294901760, %v2285_v46  ;;  %2471 = vmatpush.msrb.mxu1 %v2470_v18 }
 0xd36   :  { %2315 = vmatmul.f32.vlgmr.msra.gmra.mxu0 %v2261_v33 }
 0xd37   :  { %2361 = vmatpush.msra.mxu2 %v2286_v47  ;;  %v2287_v48 = vsub.f32 %v2285_v46, %v2286_v47  ;;  %2441 = vmatpush.msrb.mxu0 %v2440_v13 }
 0xd38   :  { %2565 = vmatpush.msra.mxu1 %v2440_v13 }
 0xd39   :  { %v2288_v49 = vand.u32 4294901760, %v2287_v48  ;;  %2494 = vmatpush.msrb.mxu2 %v2467_v14  ;;  %2543 = vmatpush.msra.mxu0 %v2468_v17 }
 0xd3b   :  { %2289 = vmatpush.msrb.mxu3 %v2288_v49 }
 0xd3c   :  { %2291 = vmatmul.f32.vlgmr.msrb.gmra.mxu3 %v2260_v29  ;;  %2363 = vmatmul.f32.vlgmr.msra.gmra.mxu2 %v2260_v29 }
 0xd3d   :  { %2383 = vmatpush.msra.mxu3 %v2258_v44 }
 0xd3f   :  { %2517 = vmatpush.msrb.mxu3 %v2440_v13 }
 0xd44   :  { %2385 = vmatmul.f32.vlgmr.msra.gmra.mxu3 %v2260_v29 }
 0xd95   :  { %v2080_v50 = vpop.xlane.xlu2 %2079 }
 0xd96   :  { %v2081_v51 = vrot.slane %v2080_v50, 4 }
 0xd98   :  { %v2082_v52 = vadd.f32 %v2081_v51, %v2080_v50 }
 0xd9a   :  { %v2083_v53 = vrot.slane %v2082_v52, 2 }
 0xd9c   :  { %v2084_v54 = vadd.f32 %v2083_v53, %v2082_v52 }
 0xd9e   :  { %v2085_v55 = vrot.slane %v2084_v54, 1 }
 0xda0   :  { %v2086_v56 = vadd.f32 %v2085_v55, %v2084_v54 }
 0xda2   :  { %2791 = vpush %v2086_v56 }
 0xdb1   :  { %v2340_v63 = vpop.f32.mrf.mxu1 }
 0xdb3   :  { %v2316_v60 = vpop.f32.mrf.mxu0 }
 0xdb7   :  { %v2266_v57 = vpop.f32.mrf.mxu2 }
 0xdbf   :  { %v2292_v58 = vpop.f32.mrf.mxu3  ;;  %v2364_v3 = vpop.f32.mrf.mxu2 }
 0xdc0   :  { %v2293_v59 = vadd.f32 %v2292_v58, %v2266_v57 }
 0xdc2   :  { %v2317_v61 = vadd.f32 %v2316_v60, %v2293_v59 }
 0xdc4   :  { %v2341_v2 = vadd.f32 %v2340_v63, %v2317_v61 }
 0xdc6   :  { %v2365_v4 = vadd.f32 %v2364_v3, %v2341_v2 }
 0xdc7   :  { %v2386_v6 = vpop.f32.mrf.mxu3 }
 0xdc8   :  { %v2387_v9 = vadd.f32 %v2386_v6, %v2365_v4 }
 0xdca   :  { %2390 = vrot.lane.b32.xlu0 %v2387_v9, %s2894_s22 }
 0xdd3   :  { %s2792_s30 = spop %2791 }
 0xdd4   :  { %v2394_v1 = vstv %s2792_s30 }
 0xdd5   :  { %v2395_v7 = vmul.f32 %v2934_v62, %v2394_v1 }
 0xdd7   :  { %2397 = vrot.lane.b32.xlu1 %v2395_v7, %s2894_s22 }
 0xe3c   :  { %v2391_v15 = vpop.permute.xlu0 %2390 }
 0xe3d   :  { %v2393_v0 = vadd.f32 %v2391_v15, %v3023_v10 }
 0xe49   :  { %v2398_v16 = vpop.permute.xlu1 %2397 }
 0xe4a   :  { %v2400_v8 = vadd.f32 %v2398_v16, %v2393_v0 }
 0xe4c   :  { %2403 = vrot.lane.b32.xlu0 %v2400_v8, %s2888_s18  ;;  %2421 = vrot.lane.b32.xlu1 %v2400_v8, %s2895_s24  ;;  %v2742_v8 = vld [vmem:[#allocation6] sm:$0xff] }
 0xe54   :  { %2572 = vrot.lane.b32.xlu1 %v3040_v11, %s2891_s0 }
 0xebe   :  { %v2404_v19 = vpop.permute.xlu0 %2403  ;;  %v2422_v12 = vpop.permute.xlu1 %2421 }
 0xebf   :  { %v2406_v20 = vmul.f32 %v2404_v19, %v3040_v11  ;;  %v2423_v10 = vsel %vm52_vm0, %v2422_v12, 0 }
 0xec0   :  { %v2442_v21 = vand.u32 4294901760, %v2423_v10 }
 0xec1   :  { %2408 = vrot.lane.b32.xlu1 %v2406_v20, %s2893_s21 }
 0xec2   :  { %v2443_v22 = vsub.f32 %v2423_v10, %v2442_v21  ;;  %2473 = vmatmul.f32.vlgmr.msrb.gmra.mxu1 %v2442_v21 }
 0xec4   :  { %v2444_v23 = vand.u32 4294901760, %v2443_v22  ;;  %2497 = vmatmul.f32.vlgmr.msrb.gmra.mxu2 %v2443_v22 }
 0xec6   :  { %v2445_v24 = vsub.f32 %v2443_v22, %v2444_v23  ;;  %2521 = vmatmul.f32.vlgmr.msrb.gmra.mxu3 %v2444_v23  ;;  %v2573_v26 = vpop.permute.xlu1 %2572 }
 0xec7   :  { %v2574_v29 = vsel %vm52_vm0, %v2573_v26, 0 }
 0xec8   :  { %v2446_v25 = vand.u32 4294901760, %v2445_v24  ;;  %v2593_v30 = vand.u32 4294901760, %v2574_v29 }
 0xeca   :  { %2447 = vmatmul.f32.vlgmr.msrb.gmra.mxu0 %v2446_v25  ;;  %2567 = vmatmul.f32.vlgmr.msra.gmra.mxu1 %v2442_v21  ;;  %v2594_v34 = vsub.f32 %v2574_v29, %v2593_v30 }
 0xecc   :  { %v2595_v37 = vand.u32 4294901760, %v2594_v34 }
 0xece   :  { %v2596_v42 = vsub.f32 %v2594_v34, %v2595_v37 }
 0xed0   :  { %v2597_v46 = vand.u32 4294901760, %v2596_v42 }
 0xed2   :  { %2545 = vmatmul.f32.vlgmr.msra.gmra.mxu0 %v2442_v21 }
 0xf33   :  { %v2409_v27 = vpop.permute.xlu1 %2408 }
 0xf34   :  { %v2411_v28 = vsel %vm52_vm0, %v2409_v27, 0.0 }
 0xf35   :  { %2412 = vadd.xlane.f32.xlu0 %v2411_v28 }
 0xf3f   :  { %v2474_v31 = vpop.f32.mrf.mxu1 }
 0xf47   :  { %v2448_v32 = vpop.f32.mrf.mxu0  ;;  %v2498_v35 = vpop.f32.mrf.mxu2 }
 0xf48   :  { %v2475_v33 = vadd.f32 %v2474_v31, %v2448_v32  ;;  %v2568_v43 = vpop.f32.mrf.mxu1 }
 0xf49   :  { %v2522_v38 = vpop.f32.mrf.mxu3 }
 0xf4a   :  { %v2499_v36 = vadd.f32 %v2498_v35, %v2475_v33 }
 0xf4c   :  { %v2523_v39 = vadd.f32 %v2522_v38, %v2499_v36 }
 0xf4f   :  { %v2546_v40 = vpop.f32.mrf.mxu0 }
 0xf50   :  { %v2547_v41 = vadd.f32 %v2546_v40, %v2523_v39 }
 0xf52   :  { %v2569_v44 = vadd.f32 %v2568_v43, %v2547_v41 }
 0xf54   :  { %v2591_v45 = vand.u32 4294901760, %v2569_v44 }
 0xf56   :  { %v2618_v47 = vsub.f32 %v2569_v44, %v2591_v45  ;;  %2592 = vmatpush.msra.mxu2 %v2591_v45  ;;  %2668 = vmatpush.msrb.mxu1 %v2591_v45 }
 0xf57   :  { %2598 = vmatmul.f32.vlgmr.msra.gmra.mxu2 %v2597_v46  ;;  %2672 = vmatmul.f32.vlgmr.msrb.gmra.mxu1 %v2595_v37 }
 0xf58   :  { %2645 = vmatpush.msrb.mxu0 %v2618_v47  ;;  %v2619_v48 = vand.u32 4294901760, %v2618_v47 }
 0xf59   :  { %2648 = vmatmul.f32.vlgmr.msrb.gmra.mxu0 %v2594_v34 }
 0xf5a   :  { %2694 = vmatpush.msrb.mxu2 %v2619_v48  ;;  %v2620_v49 = vsub.f32 %v2618_v47, %v2619_v48 }
 0xf5c   :  { %v2621_v50 = vand.u32 4294901760, %v2620_v49 }
 0xf5e   :  { %2622 = vmatpush.msra.mxu3 %v2621_v50 }
 0xf5f   :  { %2624 = vmatmul.f32.vlgmr.msra.gmra.mxu3 %v2593_v30  ;;  %2696 = vmatmul.f32.vlgmr.msrb.gmra.mxu2 %v2593_v30 }
 0xf60   :  { %2716 = vmatpush.msrb.mxu3 %v2591_v45 }
 0xf67   :  { %2718 = vmatmul.f32.vlgmr.msrb.gmra.mxu3 %v2593_v30 }
 0xfa8   :  { %v2413_v51 = vpop.xlane.xlu0 %2412 }
 0xfa9   :  { %v2414_v52 = vrot.slane %v2413_v51, 4 }
 0xfab   :  { %v2415_v53 = vadd.f32 %v2414_v52, %v2413_v51 }
 0xfad   :  { %v2416_v54 = vrot.slane %v2415_v53, 2 }
 0xfaf   :  { %v2417_v55 = vadd.f32 %v2416_v54, %v2415_v53 }
 0xfb1   :  { %v2418_v56 = vrot.slane %v2417_v55, 1 }
 0xfb3   :  { %v2419_v57 = vadd.f32 %v2418_v56, %v2417_v55 }
 0xfb5   :  { %2793 = vpush %v2419_v57 }
 0xfd4   :  { %v2673_v2 = vpop.f32.mrf.mxu1 }
 0xfd6   :  { %v2649_v61 = vpop.f32.mrf.mxu0 }
 0xfda   :  { %v2599_v58 = vpop.f32.mrf.mxu2 }
 0xfe2   :  { %v2625_v59 = vpop.f32.mrf.mxu3  ;;  %v2697_v6 = vpop.f32.mrf.mxu2 }
 0xfe3   :  { %v2626_v60 = vadd.f32 %v2625_v59, %v2599_v58 }
 0xfe5   :  { %v2650_v63 = vadd.f32 %v2649_v61, %v2626_v60 }
 0xfe6   :  { %s2794_s3 = spop %2793 }
 0xfe7   :  { %v2674_v3 = vadd.f32 %v2673_v2, %v2650_v63  ;;  %v2727_v4 = vstv %s2794_s3 }
 0xfe8   :  { %v2728_v9 = vmul.f32 %v2934_v62, %v2727_v4 }
 0xfe9   :  { %v2698_v1 = vadd.f32 %v2697_v6, %v2674_v3 }
 0xfea   :  { %v2719_v7 = vpop.f32.mrf.mxu3  ;;  %2730 = vrot.lane.b32.xlu2 %v2728_v9, %s2894_s22 }
 0xfeb   :  { %v2720_v13 = vadd.f32 %v2719_v7, %v2698_v1 }
 0xfed   :  { %2723 = vrot.lane.b32.xlu1 %v2720_v13, %s2894_s22 }
0x1044   :  { %v2731_v0 = vpop.permute.xlu2 %2730 }
0x105f   :  { %v2724_v14 = vpop.permute.xlu1 %2723 }
0x1060   :  { %v2726_v15 = vadd.f32 %v2724_v14, %v3040_v11 }
0x1062   :  { %v2733_v16 = vadd.f32 %v2731_v0, %v2726_v15 }
0x1064   :  { %2735 = vrot.lane.b32.xlu1 %v2733_v16, %s2895_s24 }
0x10d6   :  { %v2736_v17 = vpop.permute.xlu1 %2735 }
0x10d7   :  { %2738 = vst.msk [vmem:[#allocation2] sm:$0xff] %vm52_vm0, %v2736_v17  ;;  %v2743_v5 = vmul.f32 %v2742_v8, %v2736_v17 }
0x10d9   :  { %v2744_v62 = vsel %vm52_vm0, %v2743_v5, 0.0 }
0x10da   :  { %2745 = vadd.xlane.f32.xlu1 %v2744_v62 }
0x114d   :  { %v2746_v18 = vpop.xlane.xlu1 %2745 }
0x114e   :  { %v2747_v19 = vrot.slane %v2746_v18, 4 }
0x1150   :  { %v2748_v12 = vadd.f32 %v2747_v19, %v2746_v18 }
0x1152   :  { %v2749_v20 = vrot.slane %v2748_v12, 2 }
0x1154   :  { %v2750_v10 = vadd.f32 %v2749_v20, %v2748_v12 }
0x1156   :  { %v2751_v21 = vrot.slane %v2750_v10, 1 }
0x1158   :  { %v2752_v22 = vadd.f32 %v2751_v21, %v2750_v10 }
0x115a   :  { %2795 = vpush %v2752_v22 }
0x118b   :  { %s2796_s9 = spop %2795 }
0x118c   :  { %v2754_v11 = vstv %s2796_s9 }
0x118d   :  { %v2755_v23 = vmul.f32 0.5, %v2754_v11 }
0x118f   :  { %2757 = vst.msk [vmem:[#allocation8] sm:$0x1] %vm2756_vm4, %v2755_v23 }
0x1190   :  { %2768 = dma.vmem_to_hbm [thread:$0]  %s2764_s5, 16, %s2766_s8, [#allocation5]  }
0x1191   :  { %2884 = dma.done.wait [#allocation5], 16  }
0x1192   :  { %2885 = vsyncadd [#allocation5], 4294967280 }
0x1193   :  { %2773 = vsyncpa [#allocation4], 1 }
0x1194   :  { %2774 = vsyncpa [#allocation7], 1 }
0x1195   :  { %2775 = vsyncpa [#allocation5], 1 }

</bundles_post_ra>
